<compile_context>
chip_gen: v6e
topology: v6e:2x2x1
jax: 0.10.0
libtpu: 0.0.40
codegen_flags: <defaults>
</compile_context>

<pallas_src>
import numpy as np
import jax
import jax.numpy as jnp
from jax.experimental import pallas as pl
from jax.experimental.pallas import tpu as pltpu

N_FFT = 512
HOP = 256
K_TRUE = N_FFT // 2 + 1          # 257 one-sided bins
TM_MAX = 512                     # max frame rows per MXU tile


def _wmse_kernel(frames_ref, w_hi_ref, w_lo_ref, out_ref):
    """One grid step = one tile of `tm` difference-signal frames.

    frames_ref : (tm, N_FFT) f32   raw (un-windowed) frames
    w_hi_ref   : (N_FFT, N_FFT) bf16  window-folded one-sided DFT, hi part
    w_lo_ref   : (N_FFT, N_FFT) bf16  residual (W_f32 - W_hi), lo part
                 cols 0..256   -> win_n * cos(2*pi*n*k/N), k = 0..256
                 cols 257..511 -> win_n * sin(2*pi*n*k/N), k = 1..255
                 (the identically-zero imag columns of k=0 and k=N/2 are not
                  stored, so all 512 columns are useful: 3 bf16 MXU passes
                  cover all 257 one-sided bins)
    out_ref    : (8, N_FFT) f32    per-tile partial sums of |X_k|^2
    """
    tm = frames_ref.shape[0]
    f = frames_ref[...]                                       # (tm, 512) f32
    # Explicit bf16 "3x" split -- pins the matmul precision (error ~2^-18
    # relative, well inside the 2e-4 budget) at exactly 3 bf16 MXU passes.
    f_hi = f.astype(jnp.bfloat16)
    f_lo = (f - f_hi.astype(jnp.float32)).astype(jnp.bfloat16)
    w_hi = w_hi_ref[...]
    w_lo = w_lo_ref[...]

    s = jnp.dot(f_hi, w_hi, preferred_element_type=jnp.float32)
    s = s + jnp.dot(f_hi, w_lo, preferred_element_type=jnp.float32)
    s = s + jnp.dot(f_lo, w_hi, preferred_element_type=jnp.float32)

    s2 = s * s
    # Fold the M axis with sublane-aligned VPU adds only (no XLU, no scalar
    # reduce); the tiny cross-tile/final reduction happens in the wrapper.
    out_ref[...] = jnp.sum(s2.reshape(tm // 8, 8, N_FFT), axis=0)


def _frame_diff(x):
    """Gather-free center-padded framing (valid because HOP == N_FFT // 2).

    x: [..., samples] -> frames [..., n_frames, N_FFT], n_frames
    Frame f = padded[f*HOP : f*HOP + N_FFT] = chunk[f] ++ chunk[f+1].
    """
    pad = N_FFT // 2
    xp = jnp.pad(x, [(0, 0)] * (x.ndim - 1) + [(pad, pad)], mode="reflect")
    n_frames = 1 + x.shape[-1] // HOP
    xp = xp[..., : (n_frames + 1) * HOP]
    chunks = xp.reshape(*xp.shape[:-1], n_frames + 1, HOP)
    frames = jnp.concatenate([chunks[..., :-1, :], chunks[..., 1:, :]], axis=-1)
    return frames, n_frames


def _build_dft_hi_lo():
    """Window-folded one-sided DFT matrix as a bf16 (hi, lo) pair."""
    n = np.arange(N_FFT)
    win = 0.5 * (1.0 - np.cos(2.0 * np.pi * n / N_FFT))      # periodic hann
    k_cos = np.arange(K_TRUE)                                 # 0..256
    k_sin = np.arange(1, N_FFT // 2)                          # 1..255
    W = np.empty((N_FFT, N_FFT), np.float64)
    W[:, :K_TRUE] = np.cos(2.0 * np.pi * np.outer(n, k_cos) / N_FFT)
    W[:, K_TRUE:] = np.sin(2.0 * np.pi * np.outer(n, k_sin) / N_FFT)
    W *= win[:, None]
    w32 = jnp.asarray(W.astype(np.float32))
    w_hi = w32.astype(jnp.bfloat16)
    w_lo = (w32 - w_hi.astype(jnp.float32)).astype(jnp.bfloat16)
    return w_hi, w_lo


def _pick_tile_rows(m):
    """Tile rows: 512 for long audio; for short inputs, next multiple of 16
    >= ceil(m/2) so zero-row padding stays small and the grid has >= 2 steps
    (both v7x TensorCores get work)."""
    if m >= 2 * TM_MAX:
        return TM_MAX
    half = -(-m // 2)
    return int(min(TM_MAX, max(16, -(-half // 16) * 16)))


def weighted_mse_loss(outputs, target):
    """outputs, target: [B, num_spk, samples] float32. Returns scalar mean loss."""
    B, S, samples = outputs.shape
    if HOP * 2 != N_FFT:
        raise ValueError("gather-free framing assumes hop == n_fft // 2")
    if samples <= N_FFT // 2:
        raise ValueError("reflect padding requires samples > n_fft // 2")

    diff = (target - outputs).astype(jnp.float32)
    frames, n_frames = _frame_diff(diff)                     # [B, S, F, n_fft]

    # Flatten batch x spk x frames into one M axis; pad with zero rows (they
    # contribute exactly 0 to the partial sums).
    frames = frames.reshape(B * S * n_frames, N_FFT)
    M = frames.shape[0]
    tm = _pick_tile_rows(M)
    num_tiles = pl.cdiv(M, tm)
    m_pad = num_tiles * tm
    frames = jnp.pad(frames, ((0, m_pad - M), (0, 0)))

    w_hi, w_lo = _build_dft_hi_lo()

    # VMEM @ tm=512: frames 2x1 MiB + W_hi/W_lo 2x(0.5+0.5) MiB + f32
    # intermediates few MiB ~= 8 MiB, well under the explicit 32 MiB limit on
    # every generation (v7x physical VMEM is 64 MiB).
    partials = pl.pallas_call(
        _wmse_kernel,
        out_shape=jax.ShapeDtypeStruct((num_tiles * 8, N_FFT), jnp.float32),
        grid_spec=pltpu.PrefetchScalarGridSpec(
            num_scalar_prefetch=0,
            grid=(num_tiles,),
            in_specs=[
                pl.BlockSpec((tm, N_FFT), lambda i: (i, 0)),
                pl.BlockSpec((N_FFT, N_FFT), lambda i: (0, 0)),
                pl.BlockSpec((N_FFT, N_FFT), lambda i: (0, 0)),
            ],
            out_specs=pl.BlockSpec((8, N_FFT), lambda i: (i, 0)),
        ),
        compiler_params=pltpu.CompilerParams(
            dimension_semantics=("parallel",),
            vmem_limit_bytes=32 * 1024 * 1024),
    )(frames, w_hi, w_lo)

    total_sq = jnp.sum(partials)
    # reduction='mean' over [B, S, 257, n_frames]
    denom = jnp.float32(B * S * K_TRUE * n_frames)
    return total_sq / denom


if __name__ == "__main__":
    key = jax.random.PRNGKey(0)
    k1, k2 = jax.random.split(key)
    B, NUM_SPK, SAMPLES = 2, 2, 2048
    outputs = jax.random.normal(k1, (B, NUM_SPK, SAMPLES), dtype=jnp.float32)
    target = jax.random.normal(k2, (B, NUM_SPK, SAMPLES), dtype=jnp.float32)

    loss_fn = jax.jit(weighted_mse_loss)
    loss = loss_fn(outputs, target)
    jax.block_until_ready(loss)

    # Pure-JAX reference (independent gather-based framing + rfft spectrogram).
    def _ref(o, t):
        def spec(x):
            pad = N_FFT // 2
            xp = jnp.pad(x, [(0, 0)] * (x.ndim - 1) + [(pad, pad)],
                         mode="reflect")
            nfr = 1 + (xp.shape[-1] - N_FFT) // HOP
            idx = (jnp.arange(nfr) * HOP)[:, None] + jnp.arange(N_FFT)[None, :]
            fr = jnp.take(xp, idx, axis=-1)
            n = jnp.arange(N_FFT)
            w = 0.5 * (1.0 - jnp.cos(2.0 * jnp.pi * n / N_FFT))
            return jnp.fft.rfft(fr * w, axis=-1)
        d = jnp.abs(spec(t) - spec(o)) ** 2
        return d.mean()

    ref = _ref(outputs, target)
    np.testing.assert_allclose(np.asarray(loss), np.asarray(ref), rtol=2e-4)

    # TODO(synk): the other CombinedLoss branches (PIT separation loss, STOI,
    # BCE VAD, speechbrain ECAPA speaker embeddings, etc.) depend on external
    # criteria/models passed to __init__ and are out of scope for this kernel.
    print("KERNEL_OK")
</pallas_src>

<mosaic_0001>
module attributes {stable_mosaic.version = 11 : i64} {
  func.func @_wmse_kernel(%arg0: i32, %arg1: memref<32x512xf32, #tpu.memory_space<vmem>>, %arg2: memref<512x512xbf16, #tpu.memory_space<vmem>>, %arg3: memref<512x512xbf16, #tpu.memory_space<vmem>>, %arg4: memref<8x512xf32, #tpu.memory_space<vmem>>) attributes {dimension_semantics = [#tpu.dimension_semantics<parallel>], iteration_bounds = array<i64: 2>, scalar_prefetch = 0 : i64, scratch_operands = 0 : i64, tpu.core_type = #tpu.core_type<tc>, window_params = [{transform_indices = @transform_0, window_bounds = array<i64: 32, 512>}, {pipeline_mode = #tpu.pipeline_mode<synchronous>, transform_indices = @transform_1, window_bounds = array<i64: 512, 512>}, {pipeline_mode = #tpu.pipeline_mode<synchronous>, transform_indices = @transform_2, window_bounds = array<i64: 512, 512>}, {transform_indices = @transform_3, window_bounds = array<i64: 8, 512>}]} {
    %c0 = arith.constant 0 : index
    %c0_0 = arith.constant 0 : index
    %0 = vector.load %arg1[%c0, %c0_0] : memref<32x512xf32, #tpu.memory_space<vmem>>, vector<32x512xf32>
    %1 = arith.truncf %0 : vector<32x512xf32> to vector<32x512xbf16>
    %2 = arith.extf %1 : vector<32x512xbf16> to vector<32x512xf32>
    %3 = arith.subf %0, %2 : vector<32x512xf32>
    %4 = arith.truncf %3 : vector<32x512xf32> to vector<32x512xbf16>
    %c0_1 = arith.constant 0 : index
    %c0_2 = arith.constant 0 : index
    %5 = vector.load %arg2[%c0_1, %c0_2] : memref<512x512xbf16, #tpu.memory_space<vmem>>, vector<512x512xbf16>
    %c0_3 = arith.constant 0 : index
    %c0_4 = arith.constant 0 : index
    %6 = vector.load %arg3[%c0_3, %c0_4] : memref<512x512xbf16, #tpu.memory_space<vmem>>, vector<512x512xbf16>
    %cst = arith.constant dense<0.000000e+00> : vector<32x512xf32>
    %7 = tpu.matmul %1, %5, %cst {dimension_numbers = #tpu.dot_dimension_numbers<[1], [0], [0], [1], [0, 0, 1, 1], [], []>} : vector<32x512xbf16>, vector<512x512xbf16>, vector<32x512xf32> -> vector<32x512xf32>
    %cst_5 = arith.constant dense<0.000000e+00> : vector<32x512xf32>
    %8 = tpu.matmul %1, %6, %cst_5 {dimension_numbers = #tpu.dot_dimension_numbers<[1], [0], [0], [1], [0, 0, 1, 1], [], []>} : vector<32x512xbf16>, vector<512x512xbf16>, vector<32x512xf32> -> vector<32x512xf32>
    %9 = arith.addf %7, %8 : vector<32x512xf32>
    %cst_6 = arith.constant dense<0.000000e+00> : vector<32x512xf32>
    %10 = tpu.matmul %4, %5, %cst_6 {dimension_numbers = #tpu.dot_dimension_numbers<[1], [0], [0], [1], [0, 0, 1, 1], [], []>} : vector<32x512xbf16>, vector<512x512xbf16>, vector<32x512xf32> -> vector<32x512xf32>
    %11 = arith.addf %9, %10 : vector<32x512xf32>
    %12 = arith.mulf %11, %11 : vector<32x512xf32>
    %13 = vector.shape_cast %12 : vector<32x512xf32> to vector<4x8x512xf32>
    %cst_7 = arith.constant dense<0.000000e+00> : vector<8x512xf32>
    %14 = vector.multi_reduction <add>, %13, %cst_7 [0] : vector<4x8x512xf32> to vector<8x512xf32>
    %c0_8 = arith.constant 0 : index
    %c0_9 = arith.constant 0 : index
    %15 = vector.load %arg4[%c0_8, %c0_9] : memref<8x512xf32, #tpu.memory_space<vmem>>, vector<8x512xf32>
    tpu.vector_store %arg4[%c0_8, %c0_9], %14 {strides = array<i32>} : memref<8x512xf32, #tpu.memory_space<vmem>>, vector<8x512xf32>,
    return
  }
  func.func @transform_0(%arg0: i32) -> (i32, i32) {
    %c0_i32 = arith.constant 0 : i32
    %c0_i32_0 = arith.constant 0 : i32
    return %arg0, %c0_i32 : i32, i32
  }
  func.func @transform_1(%arg0: i32) -> (i32, i32) {
    %c0_i32 = arith.constant 0 : i32
    %c0_i32_0 = arith.constant 0 : i32
    %c0_i32_1 = arith.constant 0 : i32
    return %c0_i32, %c0_i32_0 : i32, i32
  }
  func.func @transform_2(%arg0: i32) -> (i32, i32) {
    %c0_i32 = arith.constant 0 : i32
    %c0_i32_0 = arith.constant 0 : i32
    %c0_i32_1 = arith.constant 0 : i32
    return %c0_i32, %c0_i32_0 : i32, i32
  }
  func.func @transform_3(%arg0: i32) -> (i32, i32) {
    %c0_i32 = arith.constant 0 : i32
    %c0_i32_0 = arith.constant 0 : i32
    return %arg0, %c0_i32 : i32, i32
  }
}

</mosaic_0001>

<bundles_post_ra>
// kernel: sub.2
= control target key start
LH: loop header
LB: loop body
LE: loop exit
PB: predicated region body
PF: predicated region fallthrough
CT: control target
= control target key end

     0   :  { %3 = vsyncpa [#allocation1], 0  ;;  %s546_s0 = inlined_call_operand.hbm [shape: f32[2,2,2048], index: 0, kind: input, shape index: {}]   ;;  %s547_s1 = inlined_call_operand.hbm [shape: f32[2,2,2048], index: 1, kind: input, shape index: {}]   ;;  %s548_s2 = inlined_call_operand.vmem [shape: f32[2,2,2048], index: 2, kind: output, shape index: {}]  }
   0x1   :  { %4 = vsyncpa [#allocation3], 0  ;;  %s425_s9 = smov [#allocation0]  }
   0x2   :  { %s8_s10 = sshll.u32 %s425_s9, 4  ;;  %s9_s10 = int_to_ptr.vmem [resolvable:$true] %s8_s10 }
   0x3   :  { %s389_s11 = scalar_lea.vmem %s9_s10, 1024  ;;  %p394_p1 = scmp.lt.s32.totalorder %s9_s10, %s9_s10 }
   0x4   :  { %p390_p0 = scmp.ne.s32.totalorder %s9_s10, %s389_s11  ;;  %p395_p2 = scmp.lt.s32.totalorder %s389_s11, %s389_s11 }
   0x6   :  { %p396_p3 = por %p395_p2, %p394_p1 }
   0x8   :  { %p397_p4 = pnand %p396_p3, %p390_p0 }
   0xa   :  { %400 = shalt.err (!%p397_p4)
}
   0xb   :  { %s426_s12 = smov 512   ;;  %s427_s13 = smov 32  }
   0xc   :  { %14 = dma.hbm_to_vmem [thread:$0]  %s546_s0, 1024, %s9_s10, [#allocation1], %s426_s12, %s426_s12, %s427_s13  }
   0xd   :  { %s428_s0 = smov [#allocation2]  }
   0xe   :  { %s18_s16 = sshll.u32 %s428_s0, 4  ;;  %s19_s16 = int_to_ptr.vmem [resolvable:$true] %s18_s16 }
   0xf   :  { %s409_s17 = scalar_lea.vmem %s19_s16, 1024  ;;  %p414_p6 = scmp.lt.s32.totalorder %s19_s16, %s19_s16 }
  0x10   :  { %p410_p5 = scmp.ne.s32.totalorder %s19_s16, %s409_s17  ;;  %p415_p7 = scmp.lt.s32.totalorder %s409_s17, %s409_s17 }
  0x12   :  { %p416_p8 = por %p415_p7, %p414_p6 }
  0x14   :  { %p417_p9 = pnand %p416_p8, %p410_p5 }
  0x16   :  { %420 = shalt.err (!%p417_p9)
}
  0x17   :  { %24 = dma.hbm_to_vmem [thread:$0]  %s547_s1, 1024, %s19_s16, [#allocation3], %s426_s12, %s426_s12, %s427_s13  }
  0x18   :  { %421 = dma.done.wait [#allocation1], 1024  }
  0x19   :  { %422 = vsyncadd [#allocation1], 4294966272 }
  0x1a   :  { %423 = dma.done.wait [#allocation3], 1024  }
  0x1b   :  { %424 = vsyncadd [#allocation3], 4294966272  ;;  %v27_v0 = vld [vmem:[#allocation0] sm:$0x3]  ;;  %v45_v5 = vld [vmem:[#allocation0 + $0x2] sm:$0x3] }
  0x1c   :  { %v28_v1 = vld [vmem:[#allocation2] sm:$0x3]  ;;  %v47_v6 = vld [vmem:[#allocation2 + $0x2] sm:$0x3]  ;;  %v65_v11 = vld [vmem:[#allocation0 + $0x4] sm:$0x3] }
  0x1d   :  { %v35_v2 = vld [vmem:[#allocation0 + $0x20] sm:$0x3]  ;;  %v31_v3 = vsub.f32 %v27_v0, %v28_v1  ;;  %v50_v8 = vsub.f32 %v45_v5, %v47_v6  ;;  %v55_v9 = vld [vmem:[#allocation0 + $0x22] sm:$0x3]  ;;  %v67_v13 = vld [vmem:[#allocation2 + $0x4] sm:$0x3] }
  0x1e   :  { %v37_v4 = vld [vmem:[#allocation2 + $0x20] sm:$0x3]  ;;  %v57_v10 = vld [vmem:[#allocation2 + $0x22] sm:$0x3]  ;;  %v75_v14 = vld [vmem:[#allocation0 + $0x24] sm:$0x3]  ;;  %v70_v16 = vsub.f32 %v65_v11, %v67_v13 }
  0x1f   :  { %v40_v7 = vsub.f32 %v35_v2, %v37_v4  ;;  %33 = vst [vmem:[%s548_s2] sm:$0x3] %v31_v3  ;;  %v60_v12 = vsub.f32 %v55_v9, %v57_v10  ;;  %v77_v15 = vld [vmem:[#allocation2 + $0x24] sm:$0x3]  ;;  %347 = vst [vmem:[%s548_s2 + $0x2] sm:$0x3] %v50_v8 }
  0x20   :  { %v80_v17 = vsub.f32 %v75_v14, %v77_v15  ;;  %v85_v18 = vld [vmem:[#allocation0 + $0x6] sm:$0x3]  ;;  %v105_v23 = vld [vmem:[#allocation0 + $0x8] sm:$0x3]  ;;  %349 = vst [vmem:[%s548_s2 + $0x4] sm:$0x3] %v70_v16 }
  0x21   :  { %346 = vst [vmem:[%s548_s2 + $0x20] sm:$0x3] %v40_v7  ;;  %v87_v19 = vld [vmem:[#allocation2 + $0x6] sm:$0x3]  ;;  %348 = vst [vmem:[%s548_s2 + $0x22] sm:$0x3] %v60_v12 }
  0x22   :  { %v95_v20 = vld [vmem:[#allocation0 + $0x26] sm:$0x3]  ;;  %v90_v21 = vsub.f32 %v85_v18, %v87_v19  ;;  %v107_v24 = vld [vmem:[#allocation2 + $0x8] sm:$0x3]  ;;  %350 = vst [vmem:[%s548_s2 + $0x24] sm:$0x3] %v80_v17 }
  0x23   :  { %v97_v22 = vld [vmem:[#allocation2 + $0x26] sm:$0x3]  ;;  %v110_v26 = vsub.f32 %v105_v23, %v107_v24  ;;  %v115_v27 = vld [vmem:[#allocation0 + $0x28] sm:$0x3]  ;;  %v125_v29 = vld [vmem:[#allocation0 + $0xa] sm:$0x3] }
  0x24   :  { %v100_v25 = vsub.f32 %v95_v20, %v97_v22  ;;  %v117_v28 = vld [vmem:[#allocation2 + $0x28] sm:$0x3]  ;;  %351 = vst [vmem:[%s548_s2 + $0x6] sm:$0x3] %v90_v21  ;;  %v127_v31 = vld [vmem:[#allocation2 + $0xa] sm:$0x3] }
  0x25   :  { %v120_v30 = vsub.f32 %v115_v27, %v117_v28  ;;  %v135_v32 = vld [vmem:[#allocation0 + $0x2a] sm:$0x3]  ;;  %353 = vst [vmem:[%s548_s2 + $0x8] sm:$0x3] %v110_v26  ;;  %v130_v34 = vsub.f32 %v125_v29, %v127_v31  ;;  %v145_v36 = vld [vmem:[#allocation0 + $0xc] sm:$0x3] }
  0x26   :  { %v137_v33 = vld [vmem:[#allocation2 + $0x2a] sm:$0x3]  ;;  %352 = vst [vmem:[%s548_s2 + $0x26] sm:$0x3] %v100_v25  ;;  %v147_v37 = vld [vmem:[#allocation2 + $0xc] sm:$0x3] }
  0x27   :  { %v140_v35 = vsub.f32 %v135_v32, %v137_v33  ;;  %v155_v38 = vld [vmem:[#allocation0 + $0x2c] sm:$0x3]  ;;  %354 = vst [vmem:[%s548_s2 + $0x28] sm:$0x3] %v120_v30  ;;  %v150_v39 = vsub.f32 %v145_v36, %v147_v37  ;;  %v165_v41 = vld [vmem:[#allocation0 + $0xe] sm:$0x3] }
  0x28   :  { %v157_v40 = vld [vmem:[#allocation2 + $0x2c] sm:$0x3]  ;;  %v167_v42 = vld [vmem:[#allocation2 + $0xe] sm:$0x3]  ;;  %355 = vst [vmem:[%s548_s2 + $0xa] sm:$0x3] %v130_v34 }
  0x29   :  { %356 = vst [vmem:[%s548_s2 + $0x2a] sm:$0x3] %v140_v35  ;;  %v160_v43 = vsub.f32 %v155_v38, %v157_v40  ;;  %v170_v44 = vsub.f32 %v165_v41, %v167_v42  ;;  %v175_v45 = vld [vmem:[#allocation0 + $0x2e] sm:$0x3]  ;;  %v185_v47 = vld [vmem:[#allocation0 + $0x10] sm:$0x3] }
  0x2a   :  { %v177_v46 = vld [vmem:[#allocation2 + $0x2e] sm:$0x3]  ;;  %357 = vst [vmem:[%s548_s2 + $0xc] sm:$0x3] %v150_v39  ;;  %v187_v49 = vld [vmem:[#allocation2 + $0x10] sm:$0x3] }
  0x2b   :  { %v180_v48 = vsub.f32 %v175_v45, %v177_v46  ;;  %v195_v50 = vld [vmem:[#allocation0 + $0x30] sm:$0x3]  ;;  %358 = vst [vmem:[%s548_s2 + $0x2c] sm:$0x3] %v160_v43  ;;  %359 = vst [vmem:[%s548_s2 + $0xe] sm:$0x3] %v170_v44  ;;  %v190_v52 = vsub.f32 %v185_v47, %v187_v49 }
  0x2c   :  { %v197_v51 = vld [vmem:[#allocation2 + $0x30] sm:$0x3]  ;;  %v205_v54 = vld [vmem:[#allocation0 + $0x12] sm:$0x3]  ;;  %v225_v59 = vld [vmem:[#allocation0 + $0x14] sm:$0x3] }
  0x2d   :  { %v200_v53 = vsub.f32 %v195_v50, %v197_v51  ;;  %v207_v55 = vld [vmem:[#allocation2 + $0x12] sm:$0x3]  ;;  %360 = vst [vmem:[%s548_s2 + $0x2e] sm:$0x3] %v180_v48  ;;  %v227_v60 = vld [vmem:[#allocation2 + $0x14] sm:$0x3] }
  0x2e   :  { %v215_v56 = vld [vmem:[#allocation0 + $0x32] sm:$0x3]  ;;  %v210_v57 = vsub.f32 %v205_v54, %v207_v55  ;;  %361 = vst [vmem:[%s548_s2 + $0x10] sm:$0x3] %v190_v52  ;;  %v230_v62 = vsub.f32 %v225_v59, %v227_v60  ;;  %v235_v63 = vld [vmem:[#allocation0 + $0x34] sm:$0x3] }
  0x2f   :  { %v217_v58 = vld [vmem:[#allocation2 + $0x32] sm:$0x3]  ;;  %362 = vst [vmem:[%s548_s2 + $0x30] sm:$0x3] %v200_v53  ;;  %v237_v0 = vld [vmem:[#allocation2 + $0x34] sm:$0x3] }
  0x30   :  { %v220_v61 = vsub.f32 %v215_v56, %v217_v58  ;;  %v245_v1 = vld [vmem:[#allocation0 + $0x16] sm:$0x3]  ;;  %363 = vst [vmem:[%s548_s2 + $0x12] sm:$0x3] %v210_v57  ;;  %v240_v2 = vsub.f32 %v235_v63, %v237_v0  ;;  %365 = vst [vmem:[%s548_s2 + $0x14] sm:$0x3] %v230_v62 }
  0x31   :  { %v247_v3 = vld [vmem:[#allocation2 + $0x16] sm:$0x3]  ;;  %v265_v8 = vld [vmem:[#allocation0 + $0x18] sm:$0x3]  ;;  %v285_v13 = vld [vmem:[#allocation0 + $0x1a] sm:$0x3] }
  0x32   :  { %v255_v4 = vld [vmem:[#allocation0 + $0x36] sm:$0x3]  ;;  %364 = vst [vmem:[%s548_s2 + $0x32] sm:$0x3] %v220_v61  ;;  %v250_v6 = vsub.f32 %v245_v1, %v247_v3  ;;  %v267_v9 = vld [vmem:[#allocation2 + $0x18] sm:$0x3] }
  0x33   :  { %v257_v5 = vld [vmem:[#allocation2 + $0x36] sm:$0x3]  ;;  %v275_v10 = vld [vmem:[#allocation0 + $0x38] sm:$0x3]  ;;  %366 = vst [vmem:[%s548_s2 + $0x34] sm:$0x3] %v240_v2  ;;  %v270_v11 = vsub.f32 %v265_v8, %v267_v9 }
  0x34   :  { %v260_v7 = vsub.f32 %v255_v4, %v257_v5  ;;  %v277_v12 = vld [vmem:[#allocation2 + $0x38] sm:$0x3]  ;;  %v287_v14 = vld [vmem:[#allocation2 + $0x1a] sm:$0x3]  ;;  %367 = vst [vmem:[%s548_s2 + $0x16] sm:$0x3] %v250_v6 }
  0x35   :  { %v280_v15 = vsub.f32 %v275_v10, %v277_v12  ;;  %v290_v16 = vsub.f32 %v285_v13, %v287_v14  ;;  %v295_v17 = vld [vmem:[#allocation0 + $0x3a] sm:$0x3]  ;;  %v305_v19 = vld [vmem:[#allocation0 + $0x1c] sm:$0x3]  ;;  %369 = vst [vmem:[%s548_s2 + $0x18] sm:$0x3] %v270_v11 }
  0x36   :  { %368 = vst [vmem:[%s548_s2 + $0x36] sm:$0x3] %v260_v7  ;;  %v297_v18 = vld [vmem:[#allocation2 + $0x3a] sm:$0x3]  ;;  %v307_v21 = vld [vmem:[#allocation2 + $0x1c] sm:$0x3] }
  0x37   :  { %v300_v20 = vsub.f32 %v295_v17, %v297_v18  ;;  %v315_v22 = vld [vmem:[#allocation0 + $0x3c] sm:$0x3]  ;;  %370 = vst [vmem:[%s548_s2 + $0x38] sm:$0x3] %v280_v15  ;;  %371 = vst [vmem:[%s548_s2 + $0x1a] sm:$0x3] %v290_v16  ;;  %v310_v24 = vsub.f32 %v305_v19, %v307_v21 }
  0x38   :  { %v317_v23 = vld [vmem:[#allocation2 + $0x3c] sm:$0x3]  ;;  %v325_v26 = vld [vmem:[#allocation0 + $0x1e] sm:$0x3] }
  0x39   :  { %v320_v25 = vsub.f32 %v315_v22, %v317_v23  ;;  %v327_v27 = vld [vmem:[#allocation2 + $0x1e] sm:$0x3]  ;;  %372 = vst [vmem:[%s548_s2 + $0x3a] sm:$0x3] %v300_v20  ;;  %373 = vst [vmem:[%s548_s2 + $0x1c] sm:$0x3] %v310_v24 }
  0x3a   :  { %v335_v28 = vld [vmem:[#allocation0 + $0x3e] sm:$0x3]  ;;  %v330_v29 = vsub.f32 %v325_v26, %v327_v27 }
  0x3b   :  { %v337_v30 = vld [vmem:[#allocation2 + $0x3e] sm:$0x3]  ;;  %374 = vst [vmem:[%s548_s2 + $0x3c] sm:$0x3] %v320_v25 }
  0x3c   :  { %v340_v31 = vsub.f32 %v335_v28, %v337_v30  ;;  %375 = vst [vmem:[%s548_s2 + $0x1e] sm:$0x3] %v330_v29 }
  0x3e   :  { %376 = vst [vmem:[%s548_s2 + $0x3e] sm:$0x3] %v340_v31 }
  0x3f   :  { %344 = vsyncpa [#allocation1], 1 }
  0x40   :  { %345 = vsyncpa [#allocation3], 1 }

// kernel: weighted_mse_loss.1
= control target key start
LH: loop header
LB: loop body
LE: loop exit
PB: predicated region body
PF: predicated region fallthrough
CT: control target
= control target key end

     0   :  { %s3221_s12 = smov 0   ;;  %s4766_s0 = inlined_call_operand.vmem [shape: f32[64,512], index: 0, kind: input, shape index: {}]   ;;  %s4767_s1 = inlined_call_operand.vmem [shape: bf16[512,512], index: 1, kind: input, shape index: {}]   ;;  %s4768_s2 = inlined_call_operand.vmem [shape: bf16[512,512], index: 2, kind: input, shape index: {}]   ;;  %s4769_s3 = inlined_call_operand.vmem [shape: f32[16,512], index: 3, kind: output, shape index: {}]  }
   0x1 LB: > { %s3227_s13 = sadd.s32 4294967295, %s3199_s12   ;;  %p2519_p0 = scmp.ge.s32.totalorder %s3199_s12, 1  ;;  %s3199_s12 = sphi %s3221_s12, %s13_s12  }
   0x2   : > { %p139_p1 = scmp.lt.s32.totalorder %s3199_s12, 3 }
   0x4   : > { %p140_p2 = pnand %p2519_p0, %p139_p1 }
   0x6   : > { %143 = sbr.rel (%p140_p2) target bundleno = 613 (0x265), region = 32 }
   0xb   : > { %v2793_v0 = vld [vmem:[%s4768_s2 + $0xe4] ss:$16 sps:$4 sm:$0xff]   ;;  %v2797_v2 = vld [vmem:[%s4768_s2 + $0xe0] ss:$16 sps:$4 sm:$0xff]   ;;  %s2520_s24 = sshll.u32 %s3227_s13, 2  ;;  %p171_p4 = scmp.lt.s32.totalorder %s3227_s13, 1 }
   0xc   : > { %v2795_v1 = vld [vmem:[%s4768_s2 + $0x2e4] ss:$16 sps:$4 sm:$0xff]   ;;  %1136 = vmatprep.subr.bf16.mxu0 %v2793_v0  ;;  %v2798_v3 = vld [vmem:[%s4768_s2 + $0x2e0] ss:$16 sps:$4 sm:$0xff]   ;;  %p165_p3 = scmp.lt.s32.totalorder %s2520_s24, 7 }
   0xd   : > { %1189 = vmatprep.subr.bf16.mxu1 %v2795_v1  ;;  %v2799_v4 = vld [vmem:[%s4768_s2 + $0xc4] ss:$16 sps:$4 sm:$0xff]   ;;  %1137 = vmatpush1.bf16.msra.mxu0 %v2797_v2  ;;  %v2803_v6 = vld [vmem:[%s4768_s2 + $0xc0] ss:$16 sps:$4 sm:$0xff]   ;;  %s5029_s13 = smov (!%p171_p4, %s3227_s13), 1 }
   0xe   : > { %1190 = vmatpush1.bf16.msra.mxu1 %v2798_v3  ;;  %v2801_v5 = vld [vmem:[%s4768_s2 + $0x2c4] ss:$16 sps:$4 sm:$0xff]   ;;  %1138 = vmatprep.subr.bf16.mxu0 %v2799_v4  ;;  %v2804_v7 = vld [vmem:[%s4768_s2 + $0x2c0] ss:$16 sps:$4 sm:$0xff]   ;;  %s5027_s24 = smov (!%p165_p3, %s2520_s24), 7 }
   0xf   : > { %1191 = vmatprep.subr.bf16.mxu1 %v2801_v5  ;;  %v2805_v8 = vld [vmem:[%s4768_s2 + $0xa4] ss:$16 sps:$4 sm:$0xff]   ;;  %v2809_v10 = vld [vmem:[%s4768_s2 + $0xa0] ss:$16 sps:$4 sm:$0xff]   ;;  %s2783_s22 = sshll.u32 %s5027_s24, 5 }
  0x10   : > { %v2807_v9 = vld [vmem:[%s4768_s2 + $0x2a4] ss:$16 sps:$4 sm:$0xff]   ;;  %v2810_v11 = vld [vmem:[%s4768_s2 + $0x2a0] ss:$16 sps:$4 sm:$0xff]   ;;  %s3367_s5 = scalar_lea.vmem %s4766_s0, %s2783_s22 }
  0x11   : > { %1139 = vmatpush1.bf16.msra.mxu0 %v2803_v6  ;;  %v2811_v12 = vld [vmem:[%s4768_s2 + $0x84] ss:$16 sps:$4 sm:$0xff]   ;;  %v2815_v14 = vld [vmem:[%s4768_s2 + $0x80] ss:$16 sps:$4 sm:$0xff]   ;;  %v177_v46 = vld [vmem:[%s3367_s5 + $0x8] sm:$0xff] }
  0x12   : > { %1192 = vmatpush1.bf16.msra.mxu1 %v2804_v7  ;;  %1140 = vmatprep.subr.bf16.mxu0 %v2805_v8  ;;  %v2813_v13 = vld [vmem:[%s4768_s2 + $0x284] ss:$16 sps:$4 sm:$0xff]   ;;  %v2816_v15 = vld [vmem:[%s4768_s2 + $0x280] ss:$16 sps:$4 sm:$0xff]   ;;  %v181_v47 = vld [vmem:[%s3367_s5 + $0x28] sm:$0xff] }
  0x13   : > { %1193 = vmatprep.subr.bf16.mxu1 %v2807_v9  ;;  %v2817_v16 = vld [vmem:[%s4768_s2 + $0x64] ss:$16 sps:$4 sm:$0xff]   ;;  %v2821_v18 = vld [vmem:[%s4768_s2 + $0x60] ss:$16 sps:$4 sm:$0xff]   ;;  %v179_v48 = vld [vmem:[%s3367_s5 + $0x18] sm:$0xff]  ;;  %v3388_v53 = vpack.c.bf16 %v181_v47, %v177_v46 }
  0x14   : > { %v2819_v17 = vld [vmem:[%s4768_s2 + $0x264] ss:$16 sps:$4 sm:$0xff]   ;;  %v2822_v19 = vld [vmem:[%s4768_s2 + $0x260] ss:$16 sps:$4 sm:$0xff]   ;;  %v183_v49 = vld [vmem:[%s3367_s5 + $0x38] sm:$0xff] }
  0x15   : > { %1141 = vmatpush1.bf16.msra.mxu0 %v2809_v10  ;;  %v2823_v20 = vld [vmem:[%s4768_s2 + $0x44] ss:$16 sps:$4 sm:$0xff]   ;;  %v2827_v22 = vld [vmem:[%s4768_s2 + $0x40] ss:$16 sps:$4 sm:$0xff]   ;;  %v3390_v54 = vpack.c.bf16 %v183_v49, %v179_v48  ;;  %1168 = vmatprep.mubr.bf16.mxu0 %v3388_v53  ;;  %v2891_v10 = vld [vmem:[%s4768_s2 + $0xec] ss:$16 sps:$4 sm:$0xff]  }
  0x16   : > { %1194 = vmatpush1.bf16.msra.mxu1 %v2810_v11  ;;  %1142 = vmatprep.subr.bf16.mxu0 %v2811_v12  ;;  %v2825_v21 = vld [vmem:[%s4768_s2 + $0x244] ss:$16 sps:$4 sm:$0xff]   ;;  %v2828_v23 = vld [vmem:[%s4768_s2 + $0x240] ss:$16 sps:$4 sm:$0xff]   ;;  %v2894_v11 = vld [vmem:[%s4768_s2 + $0x2ec] ss:$16 sps:$4 sm:$0xff]  }
  0x17   : > { %1195 = vmatprep.subr.bf16.mxu1 %v2813_v13  ;;  %v2829_v24 = vld [vmem:[%s4768_s2 + $0x24] ss:$16 sps:$4 sm:$0xff]   ;;  %v2833_v26 = vld [vmem:[%s4768_s2 + $0x20] ss:$16 sps:$4 sm:$0xff]   ;;  %1221 = vmatprep.mubr.bf16.mxu1 %v3390_v54  ;;  %v2922_v46 = vld [vmem:[%s4768_s2 + $0x248] ss:$16 sps:$4 sm:$0xff]  }
  0x18   : > { %v2831_v25 = vld [vmem:[%s4768_s2 + $0x224] ss:$16 sps:$4 sm:$0xff]   ;;  %v2834_v27 = vld [vmem:[%s4768_s2 + $0x220] ss:$16 sps:$4 sm:$0xff]   ;;  %v2927_v48 = vld [vmem:[%s4768_s2 + $0x2c] ss:$16 sps:$4 sm:$0xff]  }
  0x19   : > { %1143 = vmatpush1.bf16.msra.mxu0 %v2815_v14  ;;  %v2835_v28 = vld [vmem:[%s4768_s2 + $0x4] ss:$16 sps:$4 sm:$0xff]   ;;  %v2839_v30 = vld [vmem:[%s4768_s2] ss:$16 sps:$4 sm:$0xff]   ;;  %v2889_v14 = vld [vmem:[%s4768_s2 + $0xe8] ss:$16 sps:$4 sm:$0xff]  }
  0x1a   : > { %1196 = vmatpush1.bf16.msra.mxu1 %v2816_v15  ;;  %1144 = vmatprep.subr.bf16.mxu0 %v2817_v16  ;;  %v2837_v29 = vld [vmem:[%s4768_s2 + $0x204] ss:$16 sps:$4 sm:$0xff]   ;;  %v2840_v31 = vld [vmem:[%s4768_s2 + $0x200] ss:$16 sps:$4 sm:$0xff]   ;;  %v2892_v15 = vld [vmem:[%s4768_s2 + $0x2e8] ss:$16 sps:$4 sm:$0xff]  }
  0x1b   : > { %1197 = vmatprep.subr.bf16.mxu1 %v2819_v17  ;;  %v2841_v32 = vld [vmem:[%s4768_s2 + $0x1e4] ss:$16 sps:$4 sm:$0xff]   ;;  %v2845_v34 = vld [vmem:[%s4768_s2 + $0x1e0] ss:$16 sps:$4 sm:$0xff]   ;;  %v2897_v16 = vld [vmem:[%s4768_s2 + $0xcc] ss:$16 sps:$4 sm:$0xff]  }
  0x1c   : > { %v2843_v33 = vld [vmem:[%s4768_s2 + $0x3e4] ss:$16 sps:$4 sm:$0xff]   ;;  %v2846_v35 = vld [vmem:[%s4768_s2 + $0x3e0] ss:$16 sps:$4 sm:$0xff]   ;;  %v2900_v17 = vld [vmem:[%s4768_s2 + $0x2cc] ss:$16 sps:$4 sm:$0xff]  }
  0x1d   : > { %1145 = vmatpush1.bf16.msra.mxu0 %v2821_v18  ;;  %v2847_v36 = vld [vmem:[%s4768_s2 + $0x1c4] ss:$16 sps:$4 sm:$0xff]   ;;  %v2851_v38 = vld [vmem:[%s4768_s2 + $0x1c0] ss:$16 sps:$4 sm:$0xff]   ;;  %v2895_v18 = vld [vmem:[%s4768_s2 + $0xc8] ss:$16 sps:$4 sm:$0xff]  }
  0x1e   : > { %1198 = vmatpush1.bf16.msra.mxu1 %v2822_v19  ;;  %1146 = vmatprep.subr.bf16.mxu0 %v2823_v20  ;;  %v2849_v37 = vld [vmem:[%s4768_s2 + $0x3c4] ss:$16 sps:$4 sm:$0xff]   ;;  %v2852_v39 = vld [vmem:[%s4768_s2 + $0x3c0] ss:$16 sps:$4 sm:$0xff]   ;;  %v2898_v19 = vld [vmem:[%s4768_s2 + $0x2c8] ss:$16 sps:$4 sm:$0xff]  }
  0x1f   : > { %1199 = vmatprep.subr.bf16.mxu1 %v2825_v21  ;;  %v2853_v40 = vld [vmem:[%s4768_s2 + $0x1a4] ss:$16 sps:$4 sm:$0xff]   ;;  %v2857_v42 = vld [vmem:[%s4768_s2 + $0x1a0] ss:$16 sps:$4 sm:$0xff]   ;;  %v2903_v20 = vld [vmem:[%s4768_s2 + $0xac] ss:$16 sps:$4 sm:$0xff]  }
  0x20   : > { %v2855_v41 = vld [vmem:[%s4768_s2 + $0x3a4] ss:$16 sps:$4 sm:$0xff]   ;;  %v2858_v43 = vld [vmem:[%s4768_s2 + $0x3a0] ss:$16 sps:$4 sm:$0xff]   ;;  %v2906_v21 = vld [vmem:[%s4768_s2 + $0x2ac] ss:$16 sps:$4 sm:$0xff]  }
  0x21   : > { %1147 = vmatpush1.bf16.msra.mxu0 %v2827_v22  ;;  %v2859_v44 = vld [vmem:[%s4768_s2 + $0x184] ss:$16 sps:$4 sm:$0xff]   ;;  %v2863_v50 = vld [vmem:[%s4768_s2 + $0x180] ss:$16 sps:$4 sm:$0xff]   ;;  %v2901_v22 = vld [vmem:[%s4768_s2 + $0xa8] ss:$16 sps:$4 sm:$0xff]  }
  0x22   : > { %1200 = vmatpush1.bf16.msra.mxu1 %v2828_v23  ;;  %1148 = vmatprep.subr.bf16.mxu0 %v2829_v24  ;;  %v2861_v45 = vld [vmem:[%s4768_s2 + $0x384] ss:$16 sps:$4 sm:$0xff]   ;;  %v2864_v51 = vld [vmem:[%s4768_s2 + $0x380] ss:$16 sps:$4 sm:$0xff]   ;;  %v2904_v23 = vld [vmem:[%s4768_s2 + $0x2a8] ss:$16 sps:$4 sm:$0xff]  }
  0x23   : > { %1201 = vmatprep.subr.bf16.mxu1 %v2831_v25  ;;  %v2865_v52 = vld [vmem:[%s4768_s2 + $0x164] ss:$16 sps:$4 sm:$0xff]   ;;  %v2869_v56 = vld [vmem:[%s4768_s2 + $0x160] ss:$16 sps:$4 sm:$0xff]   ;;  %v2909_v24 = vld [vmem:[%s4768_s2 + $0x8c] ss:$16 sps:$4 sm:$0xff]  }
  0x24   : > { %v2867_v55 = vld [vmem:[%s4768_s2 + $0x364] ss:$16 sps:$4 sm:$0xff]   ;;  %v2870_v57 = vld [vmem:[%s4768_s2 + $0x360] ss:$16 sps:$4 sm:$0xff]   ;;  %v2912_v25 = vld [vmem:[%s4768_s2 + $0x28c] ss:$16 sps:$4 sm:$0xff]  }
  0x25   : > { %1149 = vmatpush1.bf16.msra.mxu0 %v2833_v26  ;;  %v2871_v58 = vld [vmem:[%s4768_s2 + $0x144] ss:$16 sps:$4 sm:$0xff]   ;;  %v2875_v60 = vld [vmem:[%s4768_s2 + $0x140] ss:$16 sps:$4 sm:$0xff]   ;;  %v2907_v26 = vld [vmem:[%s4768_s2 + $0x88] ss:$16 sps:$4 sm:$0xff]  }
  0x26   : > { %1202 = vmatpush1.bf16.msra.mxu1 %v2834_v27  ;;  %1150 = vmatprep.subr.bf16.mxu0 %v2835_v28  ;;  %v2873_v59 = vld [vmem:[%s4768_s2 + $0x344] ss:$16 sps:$4 sm:$0xff]   ;;  %v2876_v61 = vld [vmem:[%s4768_s2 + $0x340] ss:$16 sps:$4 sm:$0xff]   ;;  %v2910_v27 = vld [vmem:[%s4768_s2 + $0x288] ss:$16 sps:$4 sm:$0xff]  }
  0x27   : > { %1203 = vmatprep.subr.bf16.mxu1 %v2837_v29  ;;  %v2877_v62 = vld [vmem:[%s4768_s2 + $0x124] ss:$16 sps:$4 sm:$0xff]   ;;  %v2881_v0 = vld [vmem:[%s4768_s2 + $0x120] ss:$16 sps:$4 sm:$0xff]   ;;  %v2915_v28 = vld [vmem:[%s4768_s2 + $0x6c] ss:$16 sps:$4 sm:$0xff]  }
  0x28   : > { %v2879_v63 = vld [vmem:[%s4768_s2 + $0x324] ss:$16 sps:$4 sm:$0xff]   ;;  %v2882_v1 = vld [vmem:[%s4768_s2 + $0x320] ss:$16 sps:$4 sm:$0xff]   ;;  %v2918_v29 = vld [vmem:[%s4768_s2 + $0x26c] ss:$16 sps:$4 sm:$0xff]  }
  0x29   : > { %1151 = vmatpush1.bf16.msra.mxu0 %v2839_v30  ;;  %v2883_v2 = vld [vmem:[%s4768_s2 + $0x104] ss:$16 sps:$4 sm:$0xff]   ;;  %v2887_v4 = vld [vmem:[%s4768_s2 + $0x100] ss:$16 sps:$4 sm:$0xff]   ;;  %v2913_v30 = vld [vmem:[%s4768_s2 + $0x68] ss:$16 sps:$4 sm:$0xff]  }
  0x2a   : > { %1204 = vmatpush1.bf16.msra.mxu1 %v2840_v31  ;;  %1152 = vmatprep.subr.bf16.mxu0 %v2841_v32  ;;  %v2885_v3 = vld [vmem:[%s4768_s2 + $0x304] ss:$16 sps:$4 sm:$0xff]   ;;  %v2888_v5 = vld [vmem:[%s4768_s2 + $0x300] ss:$16 sps:$4 sm:$0xff]   ;;  %v2916_v31 = vld [vmem:[%s4768_s2 + $0x268] ss:$16 sps:$4 sm:$0xff]  }
  0x2b   : > { %1205 = vmatprep.subr.bf16.mxu1 %v2843_v33  ;;  %v176_v6 = vld [vmem:[%s3367_s5] sm:$0xff]  ;;  %v178_v8 = vld [vmem:[%s3367_s5 + $0x10] sm:$0xff]  ;;  %v2921_v32 = vld [vmem:[%s4768_s2 + $0x4c] ss:$16 sps:$4 sm:$0xff]  }
  0x2c   : > { %v180_v7 = vld [vmem:[%s3367_s5 + $0x20] sm:$0xff]  ;;  %v182_v9 = vld [vmem:[%s3367_s5 + $0x30] sm:$0xff]  ;;  %v2924_v33 = vld [vmem:[%s4768_s2 + $0x24c] ss:$16 sps:$4 sm:$0xff]  }
  0x2d   : > { %1153 = vmatpush2.bf16.msra.mxu0 %v2845_v34  ;;  %v3449_v12 = vpack.c.bf16 %v180_v7, %v176_v6  ;;  %v3451_v13 = vpack.c.bf16 %v182_v9, %v178_v8  ;;  %v185_v34 = vld [vmem:[%s3367_s5 + $0x48] sm:$0xff] }
  0x2e   : > { %1206 = vmatpush2.bf16.msra.mxu1 %v2846_v35  ;;  %1154 = vmatprep.subr.bf16.mxu0 %v2847_v36  ;;  %v189_v35 = vld [vmem:[%s3367_s5 + $0x68] sm:$0xff]  ;;  %v187_v36 = vld [vmem:[%s3367_s5 + $0x58] sm:$0xff] }
  0x2f   : > { %1207 = vmatprep.subr.bf16.mxu1 %v2849_v37  ;;  %4856 = vst [vmem:[#allocation2_spill] sm:$0xff] %v3449_v12  ;;  %4857 = vst [vmem:[#allocation3_spill] sm:$0xff] %v3451_v13  ;;  %v3518_v37 = vpack.c.bf16 %v189_v35, %v185_v34  ;;  %v2930_v49 = vld [vmem:[%s4768_s2 + $0x22c] ss:$16 sps:$4 sm:$0xff]   ;;  %v2955_v8 = vld [vmem:[%s4768_s2 + $0x188] ss:$16 sps:$4 sm:$0xff]  }
  0x30   : > { %v2957_v6 = vld [vmem:[%s4768_s2 + $0x18c] ss:$16 sps:$4 sm:$0xff]   ;;  %v2958_v9 = vld [vmem:[%s4768_s2 + $0x388] ss:$16 sps:$4 sm:$0xff]   ;;  %v3700_v34 = vld [vmem:[%s4767_s1 + $0xc0] ss:$16 sps:$4 sm:$0xff]  }
  0x31   : > { %1155 = vmatpush2.bf16.msra.mxu0 %v2851_v38  ;;  %v191_v38 = vld [vmem:[%s3367_s5 + $0x78] sm:$0xff]  ;;  %v3705_v35 = vld [vmem:[%s4767_s1 + $0x2c0] ss:$16 sps:$4 sm:$0xff]  }
  0x32   : > { %1208 = vmatpush2.bf16.msra.mxu1 %v2852_v39  ;;  %1156 = vmatprep.subr.bf16.mxu0 %v2853_v40  ;;  %v184_v39 = vld [vmem:[%s3367_s5 + $0x40] sm:$0xff]  ;;  %v2960_v7 = vld [vmem:[%s4768_s2 + $0x38c] ss:$16 sps:$4 sm:$0xff]  }
  0x33   : > { %1209 = vmatprep.subr.bf16.mxu1 %v2855_v41  ;;  %v188_v40 = vld [vmem:[%s3367_s5 + $0x60] sm:$0xff]  ;;  %v3523_v41 = vpack.c.bf16 %v191_v38, %v187_v36 }
  0x34   : > { %v3712_v36 = vld [vmem:[%s4767_s1 + $0xa4] ss:$16 sps:$4 sm:$0xff]  }
  0x35   : > { %1157 = vmatpush2.bf16.msra.mxu0 %v2857_v42  ;;  %v3525_v42 = vpack.c.bf16 %v188_v40, %v184_v39  ;;  %v3719_v38 = vld [vmem:[%s4767_s1 + $0x2a4] ss:$16 sps:$4 sm:$0xff]   ;;  %v3726_v39 = vld [vmem:[%s4767_s1 + $0xa0] ss:$16 sps:$4 sm:$0xff]  }
  0x36   : > { %1210 = vmatpush2.bf16.msra.mxu1 %v2858_v43  ;;  %1158 = vmatprep.subr.bf16.mxu0 %v2859_v44  ;;  %v186_v43 = vld [vmem:[%s3367_s5 + $0x50] sm:$0xff] }
  0x37   : > { %1211 = vmatprep.subr.bf16.mxu1 %v2861_v45  ;;  %v190_v44 = vld [vmem:[%s3367_s5 + $0x70] sm:$0xff]  ;;  %v2919_v45 = vld [vmem:[%s4768_s2 + $0x48] ss:$16 sps:$4 sm:$0xff]  }
  0x38   : > { %v3536_v47 = vpack.c.bf16 %v190_v44, %v186_v43  ;;  %v3731_v40 = vld [vmem:[%s4767_s1 + $0x2a0] ss:$16 sps:$4 sm:$0xff]   ;;  %v3738_v43 = vld [vmem:[%s4767_s1 + $0x84] ss:$16 sps:$4 sm:$0xff]  }
  0x39   : > { %1159 = vmatpush2.bf16.msra.mxu0 %v2863_v50  ;;  %v2925_v50 = vld [vmem:[%s4768_s2 + $0x28] ss:$16 sps:$4 sm:$0xff]   ;;  %v3745_v44 = vld [vmem:[%s4767_s1 + $0x284] ss:$16 sps:$4 sm:$0xff]  }
  0x3a   : > { %1212 = vmatpush2.bf16.msra.mxu1 %v2864_v51  ;;  %1160 = vmatprep.subr.bf16.mxu0 %v2865_v52  ;;  %v2928_v51 = vld [vmem:[%s4768_s2 + $0x228] ss:$16 sps:$4 sm:$0xff]   ;;  %v2933_v52 = vld [vmem:[%s4768_s2 + $0xc] ss:$16 sps:$4 sm:$0xff]  }
  0x3b   : > { %1213 = vmatprep.subr.bf16.mxu1 %v2867_v55  ;;  %v2936_v55 = vld [vmem:[%s4768_s2 + $0x20c] ss:$16 sps:$4 sm:$0xff]  }
  0x3d   : > { %1161 = vmatpush2.bf16.msra.mxu0 %v2869_v56  ;;  %v2931_v56 = vld [vmem:[%s4768_s2 + $0x8] ss:$16 sps:$4 sm:$0xff]  }
  0x3e   : > { %1214 = vmatpush2.bf16.msra.mxu1 %v2870_v57  ;;  %1162 = vmatprep.subr.bf16.mxu0 %v2871_v58  ;;  %v2934_v57 = vld [vmem:[%s4768_s2 + $0x208] ss:$16 sps:$4 sm:$0xff]   ;;  %v2939_v58 = vld [vmem:[%s4768_s2 + $0x1ec] ss:$16 sps:$4 sm:$0xff]  }
  0x3f   : > { %1215 = vmatprep.subr.bf16.mxu1 %v2873_v59  ;;  %v2942_v59 = vld [vmem:[%s4768_s2 + $0x3ec] ss:$16 sps:$4 sm:$0xff]  }
  0x41   : > { %1163 = vmatpush2.bf16.msra.mxu0 %v2875_v60  ;;  %v2937_v60 = vld [vmem:[%s4768_s2 + $0x1e8] ss:$16 sps:$4 sm:$0xff]  }
  0x42   : > { %1216 = vmatpush2.bf16.msra.mxu1 %v2876_v61  ;;  %1164 = vmatprep.subr.bf16.mxu0 %v2877_v62  ;;  %v2940_v61 = vld [vmem:[%s4768_s2 + $0x3e8] ss:$16 sps:$4 sm:$0xff]   ;;  %v2945_v62 = vld [vmem:[%s4768_s2 + $0x1cc] ss:$16 sps:$4 sm:$0xff]  }
  0x43   : > { %1217 = vmatprep.subr.bf16.mxu1 %v2879_v63  ;;  %v2948_v63 = vld [vmem:[%s4768_s2 + $0x3cc] ss:$16 sps:$4 sm:$0xff]  }
  0x45   : > { %1165 = vmatpush2.bf16.msra.mxu0 %v2881_v0  ;;  %v2943_v0 = vld [vmem:[%s4768_s2 + $0x1c8] ss:$16 sps:$4 sm:$0xff]  }
  0x46   : > { %1218 = vmatpush2.bf16.msra.mxu1 %v2882_v1  ;;  %1166 = vmatprep.subr.bf16.mxu0 %v2883_v2  ;;  %v2946_v1 = vld [vmem:[%s4768_s2 + $0x3c8] ss:$16 sps:$4 sm:$0xff]   ;;  %v2951_v2 = vld [vmem:[%s4768_s2 + $0x1ac] ss:$16 sps:$4 sm:$0xff]  }
  0x47   : > { %1219 = vmatprep.subr.bf16.mxu1 %v2885_v3  ;;  %v2954_v3 = vld [vmem:[%s4768_s2 + $0x3ac] ss:$16 sps:$4 sm:$0xff]  }
  0x49   : > { %1167 = vmatpush2.bf16.msra.mxu0 %v2887_v4  ;;  %v2949_v4 = vld [vmem:[%s4768_s2 + $0x1a8] ss:$16 sps:$4 sm:$0xff]  }
  0x4a   : > { %1220 = vmatpush2.bf16.msra.mxu1 %v2888_v5  ;;  %1242 = vmatprep.subr.bf16.mxu0 %v2891_v10  ;;  %v2952_v5 = vld [vmem:[%s4768_s2 + $0x3a8] ss:$16 sps:$4 sm:$0xff]   ;;  %v2963_v10 = vld [vmem:[%s4768_s2 + $0x16c] ss:$16 sps:$4 sm:$0xff]  }
  0x4b   : > { %1295 = vmatprep.subr.bf16.mxu1 %v2894_v11  ;;  %v2966_v11 = vld [vmem:[%s4768_s2 + $0x36c] ss:$16 sps:$4 sm:$0xff]  }
  0x4c   : > { %1169 = vmatmul.mubr.bf16.vlgmr.msra.gmra.mxu0 %v3449_v12 }
  0x4d   : > { %1222 = vmatmul.mubr.bf16.vlgmr.msra.gmra.mxu1 %v3451_v13  ;;  %1243 = vmatpush1.bf16.msra.mxu0 %v2889_v14  ;;  %v2961_v14 = vld [vmem:[%s4768_s2 + $0x168] ss:$16 sps:$4 sm:$0xff]  }
  0x4e   : > { %1296 = vmatpush1.bf16.msra.mxu1 %v2892_v15  ;;  %1244 = vmatprep.subr.bf16.mxu0 %v2897_v16  ;;  %v2964_v15 = vld [vmem:[%s4768_s2 + $0x368] ss:$16 sps:$4 sm:$0xff]   ;;  %v2969_v16 = vld [vmem:[%s4768_s2 + $0x14c] ss:$16 sps:$4 sm:$0xff]  }
  0x4f   : > { %1297 = vmatprep.subr.bf16.mxu1 %v2900_v17  ;;  %1178 = vmatprep.mubr.bf16.mxu0 %v3518_v37  ;;  %v2972_v17 = vld [vmem:[%s4768_s2 + $0x34c] ss:$16 sps:$4 sm:$0xff]  }
  0x50   : > { %1231 = vmatprep.mubr.bf16.mxu1 %v3523_v41 }
  0x51   : > { %1245 = vmatpush1.bf16.msra.mxu0 %v2895_v18  ;;  %v2967_v18 = vld [vmem:[%s4768_s2 + $0x148] ss:$16 sps:$4 sm:$0xff]  }
  0x52   : > { %1298 = vmatpush1.bf16.msra.mxu1 %v2898_v19  ;;  %1246 = vmatprep.subr.bf16.mxu0 %v2903_v20  ;;  %v2970_v19 = vld [vmem:[%s4768_s2 + $0x348] ss:$16 sps:$4 sm:$0xff]   ;;  %v2975_v20 = vld [vmem:[%s4768_s2 + $0x12c] ss:$16 sps:$4 sm:$0xff]  }
  0x53   : > { %1299 = vmatprep.subr.bf16.mxu1 %v2906_v21  ;;  %v2978_v21 = vld [vmem:[%s4768_s2 + $0x32c] ss:$16 sps:$4 sm:$0xff]  }
  0x54   : > { %1179 = vmatmul.mubr.bf16.gmra.mxu0 %v3525_v42 }
  0x55   : > { %1247 = vmatpush1.bf16.msra.mxu0 %v2901_v22  ;;  %1232 = vmatmul.mubr.bf16.gmra.mxu1 %v3536_v47  ;;  %v2973_v22 = vld [vmem:[%s4768_s2 + $0x128] ss:$16 sps:$4 sm:$0xff]  }
  0x56   : > { %1300 = vmatpush1.bf16.msra.mxu1 %v2904_v23  ;;  %1248 = vmatprep.subr.bf16.mxu0 %v2909_v24  ;;  %v2976_v23 = vld [vmem:[%s4768_s2 + $0x328] ss:$16 sps:$4 sm:$0xff]   ;;  %v2981_v24 = vld [vmem:[%s4768_s2 + $0x10c] ss:$16 sps:$4 sm:$0xff]  }
  0x57   : > { %1301 = vmatprep.subr.bf16.mxu1 %v2912_v25  ;;  %1274 = vmatprep.mubr.bf16.mxu0 %v3388_v53  ;;  %v2984_v25 = vld [vmem:[%s4768_s2 + $0x30c] ss:$16 sps:$4 sm:$0xff]  }
  0x58   : > { %1327 = vmatprep.mubr.bf16.mxu1 %v3390_v54 }
  0x59   : > { %1249 = vmatpush1.bf16.msra.mxu0 %v2907_v26  ;;  %v2979_v26 = vld [vmem:[%s4768_s2 + $0x108] ss:$16 sps:$4 sm:$0xff]  }
  0x5a   : > { %1302 = vmatpush1.bf16.msra.mxu1 %v2910_v27  ;;  %1250 = vmatprep.subr.bf16.mxu0 %v2915_v28  ;;  %v2982_v27 = vld [vmem:[%s4768_s2 + $0x308] ss:$16 sps:$4 sm:$0xff]   ;;  %v3666_v28 = vld [vmem:[%s4767_s1 + $0xe4] ss:$16 sps:$4 sm:$0xff]  }
  0x5b   : > { %1303 = vmatprep.subr.bf16.mxu1 %v2918_v29  ;;  %v3671_v29 = vld [vmem:[%s4767_s1 + $0x2e4] ss:$16 sps:$4 sm:$0xff]  }
  0x5d   : > { %1251 = vmatpush1.bf16.msra.mxu0 %v2913_v30  ;;  %v3676_v30 = vld [vmem:[%s4767_s1 + $0xe0] ss:$16 sps:$4 sm:$0xff]  }
  0x5e   : > { %1304 = vmatpush1.bf16.msra.mxu1 %v2916_v31  ;;  %1252 = vmatprep.subr.bf16.mxu0 %v2921_v32  ;;  %v3681_v31 = vld [vmem:[%s4767_s1 + $0x2e0] ss:$16 sps:$4 sm:$0xff]   ;;  %v3686_v32 = vld [vmem:[%s4767_s1 + $0xc4] ss:$16 sps:$4 sm:$0xff]  }
  0x5f   : > { %1305 = vmatprep.subr.bf16.mxu1 %v2924_v33  ;;  %v3693_v33 = vld [vmem:[%s4767_s1 + $0x2c4] ss:$16 sps:$4 sm:$0xff]  }
  0x61   : > { %1253 = vmatpush1.bf16.msra.mxu0 %v2919_v45  ;;  %v3750_v45 = vld [vmem:[%s4767_s1 + $0x80] ss:$16 sps:$4 sm:$0xff]  }
  0x62   : > { %1306 = vmatpush1.bf16.msra.mxu1 %v2922_v46  ;;  %1254 = vmatprep.subr.bf16.mxu0 %v2927_v48  ;;  %v3755_v46 = vld [vmem:[%s4767_s1 + $0x280] ss:$16 sps:$4 sm:$0xff]   ;;  %v3764_v48 = vld [vmem:[%s4767_s1 + $0x64] ss:$16 sps:$4 sm:$0xff]  }
  0x63   : > { %1307 = vmatprep.subr.bf16.mxu1 %v2930_v49  ;;  %v3771_v49 = vld [vmem:[%s4767_s1 + $0x264] ss:$16 sps:$4 sm:$0xff]  }
  0x65   : > { %1255 = vmatpush1.bf16.msra.mxu0 %v2925_v50  ;;  %v3778_v50 = vld [vmem:[%s4767_s1 + $0x60] ss:$16 sps:$4 sm:$0xff]  }
  0x66   : > { %1308 = vmatpush1.bf16.msra.mxu1 %v2928_v51  ;;  %1256 = vmatprep.subr.bf16.mxu0 %v2933_v52  ;;  %v3783_v51 = vld [vmem:[%s4767_s1 + $0x260] ss:$16 sps:$4 sm:$0xff]   ;;  %v3790_v52 = vld [vmem:[%s4767_s1 + $0x44] ss:$16 sps:$4 sm:$0xff]  }
  0x67   : > { %1309 = vmatprep.subr.bf16.mxu1 %v2936_v55  ;;  %v3797_v55 = vld [vmem:[%s4767_s1 + $0x244] ss:$16 sps:$4 sm:$0xff]  }
  0x69   : > { %1257 = vmatpush1.bf16.msra.mxu0 %v2931_v56  ;;  %v3802_v56 = vld [vmem:[%s4767_s1 + $0x40] ss:$16 sps:$4 sm:$0xff]  }
  0x6a   : > { %1310 = vmatpush1.bf16.msra.mxu1 %v2934_v57  ;;  %1258 = vmatprep.subr.bf16.mxu0 %v2939_v58  ;;  %v3807_v57 = vld [vmem:[%s4767_s1 + $0x240] ss:$16 sps:$4 sm:$0xff]   ;;  %v3814_v58 = vld [vmem:[%s4767_s1 + $0x24] ss:$16 sps:$4 sm:$0xff]  }
  0x6b   : > { %1311 = vmatprep.subr.bf16.mxu1 %v2942_v59  ;;  %v3821_v59 = vld [vmem:[%s4767_s1 + $0x224] ss:$16 sps:$4 sm:$0xff]  }
  0x6d   : > { %1259 = vmatpush2.bf16.msra.mxu0 %v2937_v60  ;;  %v3826_v60 = vld [vmem:[%s4767_s1 + $0x20] ss:$16 sps:$4 sm:$0xff]  }
  0x6e   : > { %1312 = vmatpush2.bf16.msra.mxu1 %v2940_v61  ;;  %1260 = vmatprep.subr.bf16.mxu0 %v2945_v62  ;;  %v3831_v61 = vld [vmem:[%s4767_s1 + $0x220] ss:$16 sps:$4 sm:$0xff]   ;;  %v3838_v62 = vld [vmem:[%s4767_s1 + $0x4] ss:$16 sps:$4 sm:$0xff]  }
  0x6f   : > { %1313 = vmatprep.subr.bf16.mxu1 %v2948_v63  ;;  %v3845_v63 = vld [vmem:[%s4767_s1 + $0x204] ss:$16 sps:$4 sm:$0xff]  }
  0x71   : > { %1261 = vmatpush2.bf16.msra.mxu0 %v2943_v0  ;;  %v3850_v0 = vld [vmem:[%s4767_s1] ss:$16 sps:$4 sm:$0xff]  }
  0x72   : > { %1314 = vmatpush2.bf16.msra.mxu1 %v2946_v1  ;;  %1262 = vmatprep.subr.bf16.mxu0 %v2951_v2  ;;  %v3855_v1 = vld [vmem:[%s4767_s1 + $0x200] ss:$16 sps:$4 sm:$0xff]   ;;  %v3862_v2 = vld [vmem:[%s4767_s1 + $0x1e4] ss:$16 sps:$4 sm:$0xff]  }
  0x73   : > { %1315 = vmatprep.subr.bf16.mxu1 %v2954_v3  ;;  %v3869_v3 = vld [vmem:[%s4767_s1 + $0x3e4] ss:$16 sps:$4 sm:$0xff]  }
  0x75   : > { %1263 = vmatpush2.bf16.msra.mxu0 %v2949_v4  ;;  %v3874_v4 = vld [vmem:[%s4767_s1 + $0x1e0] ss:$16 sps:$4 sm:$0xff]  }
  0x76   : > { %1316 = vmatpush2.bf16.msra.mxu1 %v2952_v5  ;;  %1264 = vmatprep.subr.bf16.mxu0 %v2957_v6  ;;  %v3879_v5 = vld [vmem:[%s4767_s1 + $0x3e0] ss:$16 sps:$4 sm:$0xff]   ;;  %v3886_v6 = vld [vmem:[%s4767_s1 + $0x1c4] ss:$16 sps:$4 sm:$0xff]  }
  0x77   : > { %1317 = vmatprep.subr.bf16.mxu1 %v2960_v7  ;;  %v3893_v7 = vld [vmem:[%s4767_s1 + $0x3c4] ss:$16 sps:$4 sm:$0xff]  }
  0x79   : > { %1265 = vmatpush2.bf16.msra.mxu0 %v2955_v8  ;;  %v3898_v8 = vld [vmem:[%s4767_s1 + $0x1c0] ss:$16 sps:$4 sm:$0xff]  }
  0x7a   : > { %1318 = vmatpush2.bf16.msra.mxu1 %v2958_v9  ;;  %1266 = vmatprep.subr.bf16.mxu0 %v2963_v10  ;;  %v3903_v9 = vld [vmem:[%s4767_s1 + $0x3c0] ss:$16 sps:$4 sm:$0xff]   ;;  %v3910_v10 = vld [vmem:[%s4767_s1 + $0x1a4] ss:$16 sps:$4 sm:$0xff]  }
  0x7b   : > { %1319 = vmatprep.subr.bf16.mxu1 %v2966_v11  ;;  %v3917_v11 = vld [vmem:[%s4767_s1 + $0x3a4] ss:$16 sps:$4 sm:$0xff]  }
  0x7d   : > { %1267 = vmatpush2.bf16.msra.mxu0 %v2961_v14  ;;  %v3922_v14 = vld [vmem:[%s4767_s1 + $0x1a0] ss:$16 sps:$4 sm:$0xff]  }
  0x7e   : > { %1320 = vmatpush2.bf16.msra.mxu1 %v2964_v15  ;;  %1268 = vmatprep.subr.bf16.mxu0 %v2969_v16  ;;  %v3927_v15 = vld [vmem:[%s4767_s1 + $0x3a0] ss:$16 sps:$4 sm:$0xff]   ;;  %v3934_v16 = vld [vmem:[%s4767_s1 + $0x184] ss:$16 sps:$4 sm:$0xff]  }
  0x7f   : > { %1321 = vmatprep.subr.bf16.mxu1 %v2972_v17  ;;  %v3941_v17 = vld [vmem:[%s4767_s1 + $0x384] ss:$16 sps:$4 sm:$0xff]  }
  0x81   : > { %1269 = vmatpush2.bf16.msra.mxu0 %v2967_v18  ;;  %v3946_v18 = vld [vmem:[%s4767_s1 + $0x180] ss:$16 sps:$4 sm:$0xff]  }
  0x82   : > { %1322 = vmatpush2.bf16.msra.mxu1 %v2970_v19  ;;  %1270 = vmatprep.subr.bf16.mxu0 %v2975_v20  ;;  %4858 = vst [vmem:[#allocation4_spill] sm:$0xff] %v3946_v18  ;;  %v3951_v19 = vld [vmem:[%s4767_s1 + $0x380] ss:$16 sps:$4 sm:$0xff]   ;;  %v3958_v20 = vld [vmem:[%s4767_s1 + $0x164] ss:$16 sps:$4 sm:$0xff]  }
  0x83   : > { %1323 = vmatprep.subr.bf16.mxu1 %v2978_v21  ;;  %4859 = vst [vmem:[#allocation5_spill] sm:$0xff] %v3951_v19  ;;  %4860 = vst [vmem:[#allocation6_spill] sm:$0xff] %v3958_v20  ;;  %v3965_v21 = vld [vmem:[%s4767_s1 + $0x364] ss:$16 sps:$4 sm:$0xff]  }
  0x84   : > { %4861 = vst [vmem:[#allocation7_spill] sm:$0xff] %v3965_v21 }
  0x85   : > { %1271 = vmatpush2.bf16.msra.mxu0 %v2973_v22  ;;  %v3972_v22 = vld [vmem:[%s4767_s1 + $0x160] ss:$16 sps:$4 sm:$0xff]  }
  0x86   : > { %1324 = vmatpush2.bf16.msra.mxu1 %v2976_v23  ;;  %1272 = vmatprep.subr.bf16.mxu0 %v2981_v24  ;;  %4862 = vst [vmem:[#allocation8_spill] sm:$0xff] %v3972_v22  ;;  %v3977_v23 = vld [vmem:[%s4767_s1 + $0x360] ss:$16 sps:$4 sm:$0xff]   ;;  %v3984_v24 = vld [vmem:[%s4767_s1 + $0x144] ss:$16 sps:$4 sm:$0xff]  }
  0x87   : > { %1325 = vmatprep.subr.bf16.mxu1 %v2984_v25  ;;  %4863 = vst [vmem:[#allocation9_spill] sm:$0xff] %v3977_v23  ;;  %4864 = vst [vmem:[#allocation10_spill] sm:$0xff] %v3984_v24  ;;  %v3989_v25 = vld [vmem:[%s4767_s1 + $0x344] ss:$16 sps:$4 sm:$0xff]  }
  0x88   : > { %4865 = vst [vmem:[#allocation11_spill] sm:$0xff] %v3989_v25 }
  0x89   : > { %1273 = vmatpush2.bf16.msra.mxu0 %v2979_v26  ;;  %v3996_v26 = vld [vmem:[%s4767_s1 + $0x140] ss:$16 sps:$4 sm:$0xff]  }
  0x8a   : > { %1326 = vmatpush2.bf16.msra.mxu1 %v2982_v27  ;;  %1988 = vmatprep.subr.bf16.mxu0 %v3666_v28  ;;  %4866 = vst [vmem:[#allocation12_spill] sm:$0xff] %v3996_v26  ;;  %v4001_v27 = vld [vmem:[%s4767_s1 + $0x340] ss:$16 sps:$4 sm:$0xff]  }
  0x8b   : > { %2041 = vmatprep.subr.bf16.mxu1 %v3671_v29  ;;  %4867 = vst [vmem:[#allocation13_spill] sm:$0xff] %v4001_v27 }
  0x8c   : > { %1275 = vmatmul.mubr.bf16.vlgmr.msra.gmra.mxu0 %v3449_v12 }
  0x8d   : > { %1328 = vmatmul.mubr.bf16.vlgmr.msra.gmra.mxu1 %v3451_v13  ;;  %1989 = vmatpush1.bf16.msra.mxu0 %v3676_v30 }
  0x8e   : > { %2042 = vmatpush1.bf16.msra.mxu1 %v3681_v31  ;;  %1990 = vmatprep.subr.bf16.mxu0 %v3686_v32 }
  0x8f   : > { %2043 = vmatprep.subr.bf16.mxu1 %v3693_v33  ;;  %1284 = vmatprep.mubr.bf16.mxu0 %v3518_v37 }
  0x90   : > { %1337 = vmatprep.mubr.bf16.mxu1 %v3523_v41 }
  0x91   : > { %1991 = vmatpush1.bf16.msra.mxu0 %v3700_v34 }
  0x92   : > { %2044 = vmatpush1.bf16.msra.mxu1 %v3705_v35  ;;  %1992 = vmatprep.subr.bf16.mxu0 %v3712_v36 }
  0x93   : > { %2045 = vmatprep.subr.bf16.mxu1 %v3719_v38 }
  0x94   : > { %1285 = vmatmul.mubr.bf16.gmra.mxu0 %v3525_v42 }
  0x95   : > { %1338 = vmatmul.mubr.bf16.gmra.mxu1 %v3536_v47  ;;  %1993 = vmatpush1.bf16.msra.mxu0 %v3726_v39 }
  0x96   : > { %2046 = vmatpush1.bf16.msra.mxu1 %v3731_v40  ;;  %1994 = vmatprep.subr.bf16.mxu0 %v3738_v43 }
  0x97   : > { %2047 = vmatprep.subr.bf16.mxu1 %v3745_v44  ;;  %2020 = vmatprep.mubr.bf16.mxu0 %v3388_v53 }
  0x98   : > { %2073 = vmatprep.mubr.bf16.mxu1 %v3390_v54 }
  0x99   : > { %1995 = vmatpush1.bf16.msra.mxu0 %v3750_v45 }
  0x9a   : > { %2048 = vmatpush1.bf16.msra.mxu1 %v3755_v46  ;;  %1996 = vmatprep.subr.bf16.mxu0 %v3764_v48 }
  0x9b   : > { %2049 = vmatprep.subr.bf16.mxu1 %v3771_v49 }
  0x9d   : > { %1997 = vmatpush1.bf16.msra.mxu0 %v3778_v50 }
  0x9e   : > { %2050 = vmatpush1.bf16.msra.mxu1 %v3783_v51  ;;  %1998 = vmatprep.subr.bf16.mxu0 %v3790_v52 }
  0x9f   : > { %2051 = vmatprep.subr.bf16.mxu1 %v3797_v55 }
  0xa1   : > { %1999 = vmatpush1.bf16.msra.mxu0 %v3802_v56 }
  0xa2   : > { %2052 = vmatpush1.bf16.msra.mxu1 %v3807_v57  ;;  %2000 = vmatprep.subr.bf16.mxu0 %v3814_v58 }
  0xa3   : > { %2053 = vmatprep.subr.bf16.mxu1 %v3821_v59 }
  0xa5   : > { %2001 = vmatpush1.bf16.msra.mxu0 %v3826_v60 }
  0xa6   : > { %2054 = vmatpush1.bf16.msra.mxu1 %v3831_v61  ;;  %2002 = vmatprep.subr.bf16.mxu0 %v3838_v62 }
  0xa7   : > { %2055 = vmatprep.subr.bf16.mxu1 %v3845_v63 }
  0xa9   : > { %2003 = vmatpush1.bf16.msra.mxu0 %v3850_v0 }
  0xaa   : > { %2056 = vmatpush1.bf16.msra.mxu1 %v3855_v1  ;;  %2004 = vmatprep.subr.bf16.mxu0 %v3862_v2 }
  0xab   : > { %2057 = vmatprep.subr.bf16.mxu1 %v3869_v3 }
  0xad   : > { %2005 = vmatpush2.bf16.msra.mxu0 %v3874_v4 }
  0xae   : > { %2058 = vmatpush2.bf16.msra.mxu1 %v3879_v5  ;;  %2006 = vmatprep.subr.bf16.mxu0 %v3886_v6 }
  0xaf   : > { %2059 = vmatprep.subr.bf16.mxu1 %v3893_v7 }
  0xb1   : > { %2007 = vmatpush2.bf16.msra.mxu0 %v3898_v8 }
  0xb2   : > { %2060 = vmatpush2.bf16.msra.mxu1 %v3903_v9  ;;  %2008 = vmatprep.subr.bf16.mxu0 %v3910_v10 }
  0xb3   : > { %2061 = vmatprep.subr.bf16.mxu1 %v3917_v11 }
  0xb5   : > { %2009 = vmatpush2.bf16.msra.mxu0 %v3922_v14 }
  0xb6   : > { %2062 = vmatpush2.bf16.msra.mxu1 %v3927_v15  ;;  %2010 = vmatprep.subr.bf16.mxu0 %v3934_v16 }
  0xb7   : > { %2063 = vmatprep.subr.bf16.mxu1 %v3941_v17 }
  0xb9   : > { %2011 = vmatpush2.bf16.msra.mxu0 %v3946_v18 }
  0xba   : > { %2064 = vmatpush2.bf16.msra.mxu1 %v3951_v19  ;;  %2012 = vmatprep.subr.bf16.mxu0 %v3958_v20 }
  0xbb   : > { %2065 = vmatprep.subr.bf16.mxu1 %v3965_v21  ;;  %v203_v21 = vunpack.c.l.bf16 %v3390_v54 }
  0xbd   : > { %2013 = vmatpush2.bf16.msra.mxu0 %v3972_v22  ;;  %v4008_v22 = vld [vmem:[%s4767_s1 + $0x124] ss:$16 sps:$4 sm:$0xff]  }
  0xbe   : > { %2066 = vmatpush2.bf16.msra.mxu1 %v3977_v23  ;;  %2014 = vmatprep.subr.bf16.mxu0 %v3984_v24  ;;  %4868 = vst [vmem:[#allocation14_spill] sm:$0xff] %v4008_v22  ;;  %v4013_v23 = vld [vmem:[%s4767_s1 + $0x324] ss:$16 sps:$4 sm:$0xff]   ;;  %v4020_v24 = vld [vmem:[%s4767_s1 + $0x120] ss:$16 sps:$4 sm:$0xff]  }
  0xbf   : > { %2067 = vmatprep.subr.bf16.mxu1 %v3989_v25  ;;  %4869 = vst [vmem:[#allocation15_spill] sm:$0xff] %v4013_v23  ;;  %4870 = vst [vmem:[#allocation16_spill] sm:$0xff] %v4020_v24  ;;  %v4025_v25 = vld [vmem:[%s4767_s1 + $0x320] ss:$16 sps:$4 sm:$0xff]  }
  0xc0   : > { %4871 = vst [vmem:[#allocation17_spill] sm:$0xff] %v4025_v25 }
  0xc1   : > { %2015 = vmatpush2.bf16.msra.mxu0 %v3996_v26  ;;  %v4032_v26 = vld [vmem:[%s4767_s1 + $0x104] ss:$16 sps:$4 sm:$0xff]  }
  0xc2   : > { %2068 = vmatpush2.bf16.msra.mxu1 %v4001_v27  ;;  %2016 = vmatprep.subr.bf16.mxu0 %v4008_v22  ;;  %4872 = vst [vmem:[#allocation18_spill] sm:$0xff] %v4032_v26  ;;  %v4037_v27 = vld [vmem:[%s4767_s1 + $0x304] ss:$16 sps:$4 sm:$0xff]   ;;  %v4044_v22 = vld [vmem:[%s4767_s1 + $0x100] ss:$16 sps:$4 sm:$0xff]  }
  0xc3   : > { %2069 = vmatprep.subr.bf16.mxu1 %v4013_v23  ;;  %4873 = vst [vmem:[#allocation19_spill] sm:$0xff] %v4037_v27  ;;  %4874 = vst [vmem:[#allocation20_spill] sm:$0xff] %v4044_v22  ;;  %v4049_v23 = vld [vmem:[%s4767_s1 + $0x300] ss:$16 sps:$4 sm:$0xff]  }
  0xc4   : > { %4875 = vst [vmem:[#allocation21_spill] sm:$0xff] %v4049_v23 }
  0xc5   : > { %2017 = vmatpush2.bf16.msra.mxu0 %v4020_v24  ;;  %v4056_v24 = vld [vmem:[%s4767_s1 + $0xec] ss:$16 sps:$4 sm:$0xff]  }
  0xc6   : > { %2070 = vmatpush2.bf16.msra.mxu1 %v4025_v25  ;;  %2018 = vmatprep.subr.bf16.mxu0 %v4032_v26  ;;  %4876 = vst [vmem:[#allocation22_spill] sm:$0xff] %v4056_v24  ;;  %v4061_v25 = vld [vmem:[%s4767_s1 + $0x2ec] ss:$16 sps:$4 sm:$0xff]   ;;  %v4068_v26 = vld [vmem:[%s4767_s1 + $0xe8] ss:$16 sps:$4 sm:$0xff]  }
  0xc7   : > { %2071 = vmatprep.subr.bf16.mxu1 %v4037_v27  ;;  %4877 = vst [vmem:[#allocation23_spill] sm:$0xff] %v4061_v25  ;;  %4878 = vst [vmem:[#allocation24_spill] sm:$0xff] %v4068_v26  ;;  %v4073_v27 = vld [vmem:[%s4767_s1 + $0x2e8] ss:$16 sps:$4 sm:$0xff]  }
  0xc8   : > { %4879 = vst [vmem:[#allocation25_spill] sm:$0xff] %v4073_v27 }
  0xc9   : > { %2019 = vmatpush2.bf16.msra.mxu0 %v4044_v22  ;;  %v4080_v22 = vld [vmem:[%s4767_s1 + $0xcc] ss:$16 sps:$4 sm:$0xff]  }
  0xca   : > { %2072 = vmatpush2.bf16.msra.mxu1 %v4049_v23  ;;  %2094 = vmatprep.subr.bf16.mxu0 %v4056_v24  ;;  %4880 = vst [vmem:[#allocation26_spill] sm:$0xff] %v4080_v22  ;;  %v4085_v23 = vld [vmem:[%s4767_s1 + $0x2cc] ss:$16 sps:$4 sm:$0xff]   ;;  %v4099_v24 = vld [vmem:[%s4767_s1 + $0x2c8] ss:$16 sps:$4 sm:$0xff]  }
  0xcb   : > { %2147 = vmatprep.subr.bf16.mxu1 %v4061_v25  ;;  %4881 = vst [vmem:[#allocation27_spill] sm:$0xff] %v4085_v23  ;;  %v4094_v25 = vld [vmem:[%s4767_s1 + $0xc8] ss:$16 sps:$4 sm:$0xff]   ;;  %4883 = vst [vmem:[#allocation29_spill] sm:$0xff] %v4099_v24 }
  0xcc   : > { %2021 = vmatmul.mubr.bf16.vlgmr.msra.gmra.mxu0 %v3449_v12  ;;  %4882 = vst [vmem:[#allocation28_spill] sm:$0xff] %v4094_v25 }
  0xcd   : > { %2074 = vmatmul.mubr.bf16.vlgmr.msra.gmra.mxu1 %v3451_v13  ;;  %2095 = vmatpush1.bf16.msra.mxu0 %v4068_v26  ;;  %v4106_v26 = vld [vmem:[%s4767_s1 + $0xac] ss:$16 sps:$4 sm:$0xff]  }
  0xce   : > { %2148 = vmatpush1.bf16.msra.mxu1 %v4073_v27  ;;  %2096 = vmatprep.subr.bf16.mxu0 %v4080_v22  ;;  %4884 = vst [vmem:[#allocation30_spill] sm:$0xff] %v4106_v26  ;;  %v4111_v27 = vld [vmem:[%s4767_s1 + $0x2ac] ss:$16 sps:$4 sm:$0xff]   ;;  %v4125_v22 = vld [vmem:[%s4767_s1 + $0x2a8] ss:$16 sps:$4 sm:$0xff]  }
  0xcf   : > { %2149 = vmatprep.subr.bf16.mxu1 %v4085_v23  ;;  %4885 = vst [vmem:[#allocation31_spill] sm:$0xff] %v4111_v27  ;;  %2030 = vmatprep.mubr.bf16.mxu0 %v3518_v37  ;;  %v4120_v23 = vld [vmem:[%s4767_s1 + $0xa8] ss:$16 sps:$4 sm:$0xff]   ;;  %4887 = vst [vmem:[#allocation33_spill] sm:$0xff] %v4125_v22 }
  0xd0   : > { %2083 = vmatprep.mubr.bf16.mxu1 %v3523_v41  ;;  %4886 = vst [vmem:[#allocation32_spill] sm:$0xff] %v4120_v23 }
  0xd1   : > { %2097 = vmatpush1.bf16.msra.mxu0 %v4094_v25  ;;  %v4132_v25 = vld [vmem:[%s4767_s1 + $0x8c] ss:$16 sps:$4 sm:$0xff]  }
  0xd2   : > { %2150 = vmatpush1.bf16.msra.mxu1 %v4099_v24  ;;  %2098 = vmatprep.subr.bf16.mxu0 %v4106_v26  ;;  %4888 = vst [vmem:[#allocation34_spill] sm:$0xff] %v4132_v25  ;;  %v4137_v24 = vld [vmem:[%s4767_s1 + $0x28c] ss:$16 sps:$4 sm:$0xff]   ;;  %v4151_v26 = vld [vmem:[%s4767_s1 + $0x288] ss:$16 sps:$4 sm:$0xff]  }
  0xd3   : > { %2151 = vmatprep.subr.bf16.mxu1 %v4111_v27  ;;  %4889 = vst [vmem:[#allocation35_spill] sm:$0xff] %v4137_v24  ;;  %v4146_v27 = vld [vmem:[%s4767_s1 + $0x88] ss:$16 sps:$4 sm:$0xff]   ;;  %4891 = vst [vmem:[#allocation37_spill] sm:$0xff] %v4151_v26 }
  0xd4   : > { %2031 = vmatmul.mubr.bf16.gmra.mxu0 %v3525_v42  ;;  %4890 = vst [vmem:[#allocation36_spill] sm:$0xff] %v4146_v27 }
  0xd5   : > { %2084 = vmatmul.mubr.bf16.gmra.mxu1 %v3536_v47  ;;  %2099 = vmatpush1.bf16.msra.mxu0 %v4120_v23  ;;  %v4158_v23 = vld [vmem:[%s4767_s1 + $0x6c] ss:$16 sps:$4 sm:$0xff]  }
  0xd6   : > { %2152 = vmatpush1.bf16.msra.mxu1 %v4125_v22  ;;  %2100 = vmatprep.subr.bf16.mxu0 %v4132_v25  ;;  %4892 = vst [vmem:[#allocation38_spill] sm:$0xff] %v4158_v23  ;;  %v4163_v22 = vld [vmem:[%s4767_s1 + $0x26c] ss:$16 sps:$4 sm:$0xff]   ;;  %v4177_v25 = vld [vmem:[%s4767_s1 + $0x268] ss:$16 sps:$4 sm:$0xff]  }
  0xd7   : > { %2153 = vmatprep.subr.bf16.mxu1 %v4137_v24  ;;  %4893 = vst [vmem:[#allocation39_spill] sm:$0xff] %v4163_v22  ;;  %2126 = vmatprep.mubr.bf16.mxu0 %v3388_v53  ;;  %v4172_v24 = vld [vmem:[%s4767_s1 + $0x68] ss:$16 sps:$4 sm:$0xff]   ;;  %4895 = vst [vmem:[#allocation41_spill] sm:$0xff] %v4177_v25 }
  0xd8   : > { %2179 = vmatprep.mubr.bf16.mxu1 %v3390_v54  ;;  %4894 = vst [vmem:[#allocation40_spill] sm:$0xff] %v4172_v24 }
  0xd9   : > { %2101 = vmatpush1.bf16.msra.mxu0 %v4146_v27  ;;  %v4184_v27 = vld [vmem:[%s4767_s1 + $0x4c] ss:$16 sps:$4 sm:$0xff]  }
  0xda   : > { %2154 = vmatpush1.bf16.msra.mxu1 %v4151_v26  ;;  %2102 = vmatprep.subr.bf16.mxu0 %v4158_v23  ;;  %4896 = vst [vmem:[#allocation42_spill] sm:$0xff] %v4184_v27  ;;  %v4189_v26 = vld [vmem:[%s4767_s1 + $0x24c] ss:$16 sps:$4 sm:$0xff]   ;;  %v4196_v23 = vld [vmem:[%s4767_s1 + $0x48] ss:$16 sps:$4 sm:$0xff]  }
  0xdb   : > { %2155 = vmatprep.subr.bf16.mxu1 %v4163_v22  ;;  %4897 = vst [vmem:[#allocation43_spill] sm:$0xff] %v4189_v26  ;;  %4898 = vst [vmem:[#allocation44_spill] sm:$0xff] %v4196_v23  ;;  %v4201_v22 = vld [vmem:[%s4767_s1 + $0x248] ss:$16 sps:$4 sm:$0xff]  }
  0xdc   : > { %4899 = vst [vmem:[#allocation45_spill] sm:$0xff] %v4201_v22 }
  0xdd   : > { %2103 = vmatpush1.bf16.msra.mxu0 %v4172_v24  ;;  %v4208_v24 = vld [vmem:[%s4767_s1 + $0x2c] ss:$16 sps:$4 sm:$0xff]  }
  0xde   : > { %2156 = vmatpush1.bf16.msra.mxu1 %v4177_v25  ;;  %2104 = vmatprep.subr.bf16.mxu0 %v4184_v27  ;;  %4900 = vst [vmem:[#allocation46_spill] sm:$0xff] %v4208_v24  ;;  %v4213_v25 = vld [vmem:[%s4767_s1 + $0x22c] ss:$16 sps:$4 sm:$0xff]   ;;  %v4220_v27 = vld [vmem:[%s4767_s1 + $0x28] ss:$16 sps:$4 sm:$0xff]  }
  0xdf   : > { %2157 = vmatprep.subr.bf16.mxu1 %v4189_v26  ;;  %4901 = vst [vmem:[#allocation47_spill] sm:$0xff] %v4213_v25  ;;  %4902 = vst [vmem:[#allocation48_spill] sm:$0xff] %v4220_v27  ;;  %v4225_v26 = vld [vmem:[%s4767_s1 + $0x228] ss:$16 sps:$4 sm:$0xff]  }
  0xe0   : > { %4903 = vst [vmem:[#allocation49_spill] sm:$0xff] %v4225_v26 }
  0xe1   : > { %2105 = vmatpush1.bf16.msra.mxu0 %v4196_v23  ;;  %v4232_v23 = vld [vmem:[%s4767_s1 + $0xc] ss:$16 sps:$4 sm:$0xff]  }
  0xe2   : > { %2158 = vmatpush1.bf16.msra.mxu1 %v4201_v22  ;;  %2106 = vmatprep.subr.bf16.mxu0 %v4208_v24  ;;  %4904 = vst [vmem:[#allocation50_spill] sm:$0xff] %v4232_v23  ;;  %v4237_v22 = vld [vmem:[%s4767_s1 + $0x20c] ss:$16 sps:$4 sm:$0xff]   ;;  %v4244_v24 = vld [vmem:[%s4767_s1 + $0x8] ss:$16 sps:$4 sm:$0xff]  }
  0xe3   : > { %2159 = vmatprep.subr.bf16.mxu1 %v4213_v25  ;;  %4905 = vst [vmem:[#allocation51_spill] sm:$0xff] %v4237_v22  ;;  %4906 = vst [vmem:[#allocation52_spill] sm:$0xff] %v4244_v24  ;;  %v4249_v25 = vld [vmem:[%s4767_s1 + $0x208] ss:$16 sps:$4 sm:$0xff]  }
  0xe4   : > { %4907 = vst [vmem:[#allocation53_spill] sm:$0xff] %v4249_v25 }
  0xe5   : > { %2107 = vmatpush1.bf16.msra.mxu0 %v4220_v27  ;;  %v4256_v27 = vld [vmem:[%s4767_s1 + $0x1ec] ss:$16 sps:$4 sm:$0xff]  }
  0xe6   : > { %2160 = vmatpush1.bf16.msra.mxu1 %v4225_v26  ;;  %2108 = vmatprep.subr.bf16.mxu0 %v4232_v23  ;;  %4908 = vst [vmem:[#allocation54_spill] sm:$0xff] %v4256_v27  ;;  %v4261_v26 = vld [vmem:[%s4767_s1 + $0x3ec] ss:$16 sps:$4 sm:$0xff]   ;;  %v4268_v23 = vld [vmem:[%s4767_s1 + $0x1e8] ss:$16 sps:$4 sm:$0xff]  }
  0xe7   : > { %2161 = vmatprep.subr.bf16.mxu1 %v4237_v22  ;;  %4909 = vst [vmem:[#allocation55_spill] sm:$0xff] %v4261_v26  ;;  %4910 = vst [vmem:[#allocation56_spill] sm:$0xff] %v4268_v23  ;;  %v4273_v22 = vld [vmem:[%s4767_s1 + $0x3e8] ss:$16 sps:$4 sm:$0xff]  }
  0xe8   : > { %4911 = vst [vmem:[#allocation57_spill] sm:$0xff] %v4273_v22 }
  0xe9   : > { %2109 = vmatpush1.bf16.msra.mxu0 %v4244_v24  ;;  %v4280_v24 = vld [vmem:[%s4767_s1 + $0x1cc] ss:$16 sps:$4 sm:$0xff]  }
  0xea   : > { %2162 = vmatpush1.bf16.msra.mxu1 %v4249_v25  ;;  %2110 = vmatprep.subr.bf16.mxu0 %v4256_v27  ;;  %4912 = vst [vmem:[#allocation58_spill] sm:$0xff] %v4280_v24  ;;  %v4285_v25 = vld [vmem:[%s4767_s1 + $0x3cc] ss:$16 sps:$4 sm:$0xff]   ;;  %v4292_v27 = vld [vmem:[%s4767_s1 + $0x1c8] ss:$16 sps:$4 sm:$0xff]  }
  0xeb   : > { %2163 = vmatprep.subr.bf16.mxu1 %v4261_v26  ;;  %4913 = vst [vmem:[#allocation59_spill] sm:$0xff] %v4285_v25  ;;  %4914 = vst [vmem:[#allocation60_spill] sm:$0xff] %v4292_v27  ;;  %v4297_v26 = vld [vmem:[%s4767_s1 + $0x3c8] ss:$16 sps:$4 sm:$0xff]  }
  0xec   : > { %4915 = vst [vmem:[#allocation61_spill] sm:$0xff] %v4297_v26 }
  0xed   : > { %2111 = vmatpush2.bf16.msra.mxu0 %v4268_v23  ;;  %v4304_v23 = vld [vmem:[%s4767_s1 + $0x1ac] ss:$16 sps:$4 sm:$0xff]  }
  0xee   : > { %2164 = vmatpush2.bf16.msra.mxu1 %v4273_v22  ;;  %2112 = vmatprep.subr.bf16.mxu0 %v4280_v24  ;;  %4916 = vst [vmem:[#allocation62_spill] sm:$0xff] %v4304_v23  ;;  %v4309_v22 = vld [vmem:[%s4767_s1 + $0x3ac] ss:$16 sps:$4 sm:$0xff]   ;;  %v4316_v24 = vld [vmem:[%s4767_s1 + $0x1a8] ss:$16 sps:$4 sm:$0xff]  }
  0xef   : > { %2165 = vmatprep.subr.bf16.mxu1 %v4285_v25  ;;  %4917 = vst [vmem:[#allocation63_spill] sm:$0xff] %v4309_v22  ;;  %4918 = vst [vmem:[#allocation64_spill] sm:$0xff] %v4316_v24  ;;  %v4321_v25 = vld [vmem:[%s4767_s1 + $0x3a8] ss:$16 sps:$4 sm:$0xff]  }
  0xf0   : > { %4919 = vst [vmem:[#allocation65_spill] sm:$0xff] %v4321_v25 }
  0xf1   : > { %2113 = vmatpush2.bf16.msra.mxu0 %v4292_v27  ;;  %v4328_v27 = vld [vmem:[%s4767_s1 + $0x18c] ss:$16 sps:$4 sm:$0xff]  }
  0xf2   : > { %2166 = vmatpush2.bf16.msra.mxu1 %v4297_v26  ;;  %2114 = vmatprep.subr.bf16.mxu0 %v4304_v23  ;;  %4920 = vst [vmem:[#allocation66_spill] sm:$0xff] %v4328_v27  ;;  %v4333_v26 = vld [vmem:[%s4767_s1 + $0x38c] ss:$16 sps:$4 sm:$0xff]   ;;  %v4340_v23 = vld [vmem:[%s4767_s1 + $0x188] ss:$16 sps:$4 sm:$0xff]  }
  0xf3   : > { %2167 = vmatprep.subr.bf16.mxu1 %v4309_v22  ;;  %4921 = vst [vmem:[#allocation67_spill] sm:$0xff] %v4333_v26  ;;  %4922 = vst [vmem:[#allocation68_spill] sm:$0xff] %v4340_v23  ;;  %v4345_v22 = vld [vmem:[%s4767_s1 + $0x388] ss:$16 sps:$4 sm:$0xff]  }
  0xf4   : > { %4923 = vst [vmem:[#allocation69_spill] sm:$0xff] %v4345_v22 }
  0xf5   : > { %2115 = vmatpush2.bf16.msra.mxu0 %v4316_v24  ;;  %v4352_v24 = vld [vmem:[%s4767_s1 + $0x16c] ss:$16 sps:$4 sm:$0xff]  }
  0xf6   : > { %2168 = vmatpush2.bf16.msra.mxu1 %v4321_v25  ;;  %2116 = vmatprep.subr.bf16.mxu0 %v4328_v27  ;;  %4924 = vst [vmem:[#allocation70_spill] sm:$0xff] %v4352_v24  ;;  %v4357_v25 = vld [vmem:[%s4767_s1 + $0x36c] ss:$16 sps:$4 sm:$0xff]   ;;  %v4364_v27 = vld [vmem:[%s4767_s1 + $0x168] ss:$16 sps:$4 sm:$0xff]  }
  0xf7   : > { %2169 = vmatprep.subr.bf16.mxu1 %v4333_v26  ;;  %4925 = vst [vmem:[#allocation71_spill] sm:$0xff] %v4357_v25  ;;  %4926 = vst [vmem:[#allocation72_spill] sm:$0xff] %v4364_v27  ;;  %v4369_v26 = vld [vmem:[%s4767_s1 + $0x368] ss:$16 sps:$4 sm:$0xff]  }
  0xf8   : > { %4927 = vst [vmem:[#allocation73_spill] sm:$0xff] %v4369_v26 }
  0xf9   : > { %2117 = vmatpush2.bf16.msra.mxu0 %v4340_v23  ;;  %v4376_v23 = vld [vmem:[%s4767_s1 + $0x14c] ss:$16 sps:$4 sm:$0xff]  }
  0xfa   : > { %2170 = vmatpush2.bf16.msra.mxu1 %v4345_v22  ;;  %2118 = vmatprep.subr.bf16.mxu0 %v4352_v24  ;;  %4928 = vst [vmem:[#allocation74_spill] sm:$0xff] %v4376_v23  ;;  %v4381_v22 = vld [vmem:[%s4767_s1 + $0x34c] ss:$16 sps:$4 sm:$0xff]   ;;  %v4388_v24 = vld [vmem:[%s4767_s1 + $0x148] ss:$16 sps:$4 sm:$0xff]  }
  0xfb   : > { %2171 = vmatprep.subr.bf16.mxu1 %v4357_v25  ;;  %4929 = vst [vmem:[#allocation75_spill] sm:$0xff] %v4381_v22  ;;  %4930 = vst [vmem:[#allocation76_spill] sm:$0xff] %v4388_v24  ;;  %v4393_v25 = vld [vmem:[%s4767_s1 + $0x348] ss:$16 sps:$4 sm:$0xff]  }
  0xfc   : > { %4931 = vst [vmem:[#allocation77_spill] sm:$0xff] %v4393_v25 }
  0xfd   : > { %2119 = vmatpush2.bf16.msra.mxu0 %v4364_v27  ;;  %v4400_v27 = vld [vmem:[%s4767_s1 + $0x12c] ss:$16 sps:$4 sm:$0xff]  }
  0xfe   : > { %2172 = vmatpush2.bf16.msra.mxu1 %v4369_v26  ;;  %2120 = vmatprep.subr.bf16.mxu0 %v4376_v23  ;;  %4932 = vst [vmem:[#allocation78_spill] sm:$0xff] %v4400_v27  ;;  %v4405_v26 = vld [vmem:[%s4767_s1 + $0x32c] ss:$16 sps:$4 sm:$0xff]   ;;  %v4412_v23 = vld [vmem:[%s4767_s1 + $0x128] ss:$16 sps:$4 sm:$0xff]  }
  0xff   : > { %2173 = vmatprep.subr.bf16.mxu1 %v4381_v22  ;;  %4933 = vst [vmem:[#allocation79_spill] sm:$0xff] %v4405_v26  ;;  %4934 = vst [vmem:[#allocation80_spill] sm:$0xff] %v4412_v23  ;;  %v4417_v22 = vld [vmem:[%s4767_s1 + $0x328] ss:$16 sps:$4 sm:$0xff]  }
 0x100   : > { %4935 = vst [vmem:[#allocation81_spill] sm:$0xff] %v4417_v22 }
 0x101   : > { %2121 = vmatpush2.bf16.msra.mxu0 %v4388_v24  ;;  %v4424_v24 = vld [vmem:[%s4767_s1 + $0x10c] ss:$16 sps:$4 sm:$0xff]  }
 0x102   : > { %2174 = vmatpush2.bf16.msra.mxu1 %v4393_v25  ;;  %2122 = vmatprep.subr.bf16.mxu0 %v4400_v27  ;;  %4936 = vst [vmem:[#allocation82_spill] sm:$0xff] %v4424_v24  ;;  %v4429_v25 = vld [vmem:[%s4767_s1 + $0x30c] ss:$16 sps:$4 sm:$0xff]   ;;  %v4436_v27 = vld [vmem:[%s4767_s1 + $0x108] ss:$16 sps:$4 sm:$0xff]  }
 0x103   : > { %2175 = vmatprep.subr.bf16.mxu1 %v4405_v26  ;;  %4937 = vst [vmem:[#allocation83_spill] sm:$0xff] %v4429_v25  ;;  %4938 = vst [vmem:[#allocation84_spill] sm:$0xff] %v4436_v27  ;;  %v4441_v26 = vld [vmem:[%s4767_s1 + $0x308] ss:$16 sps:$4 sm:$0xff]  }
 0x104   : > { %4939 = vst [vmem:[#allocation85_spill] sm:$0xff] %v4441_v26 }
 0x105   : > { %2123 = vmatpush2.bf16.msra.mxu0 %v4412_v23  ;;  %v205_v23 = vunpack.c.h.bf16 %v3388_v53 }
 0x106   : > { %2176 = vmatpush2.bf16.msra.mxu1 %v4417_v22  ;;  %2124 = vmatprep.subr.bf16.mxu0 %v4424_v24  ;;  %v201_v22 = vunpack.c.l.bf16 %v3388_v53  ;;  %v207_v24 = vunpack.c.h.bf16 %v3390_v54  ;;  %v3177_v54 = vld [vmem:[%s3367_s5 + $0x8] sm:$0xff] }
 0x107   : > { %2177 = vmatprep.subr.bf16.mxu1 %v4429_v25 }
 0x109   : > { %2125 = vmatpush2.bf16.msra.mxu0 %v4436_v27  ;;  %v3178_v27 = vld [vmem:[%s3367_s5 + $0x28] sm:$0xff] }
 0x10a   : > { %2178 = vmatpush2.bf16.msra.mxu1 %v4441_v26  ;;  %2200 = vmatprep.subr.bf16.mxu0 %v3666_v28  ;;  %v217_v26 = vsub.f32 %v3177_v54, %v201_v22 }
 0x10b   : > { %2253 = vmatprep.subr.bf16.mxu1 %v3671_v29 }
 0x10c   : > { %v1170_v20 = vpop.f32.mrf.mxu0  ;;  %2127 = vmatmul.mubr.bf16.vlgmr.msra.gmra.mxu0 %v3449_v12  ;;  %v221_v12 = vsub.f32 %v3178_v27, %v205_v23  ;;  %v3187_v27 = vld [vmem:[%s3367_s5 + $0x58] sm:$0xff] }
 0x10d   : > { %v1223_v25 = vpop.f32.mrf.mxu1  ;;  %2180 = vmatmul.mubr.bf16.vlgmr.msra.gmra.mxu1 %v3451_v13  ;;  %2201 = vmatpush1.bf16.msra.mxu0 %v3676_v30 }
 0x10e   : > { %v4455_v28 = vadd.f32 %v1223_v25, %v1170_v20  ;;  %2254 = vmatpush1.bf16.msra.mxu1 %v3681_v31  ;;  %v1172_v53 = vpop.f32.mrf.mxu0  ;;  %2202 = vmatprep.subr.bf16.mxu0 %v3686_v32  ;;  %v3179_v20 = vld [vmem:[%s3367_s5 + $0x18] sm:$0xff]  ;;  %v4477_v23 = vpack.c.bf16 %v221_v12, %v217_v26  ;;  %v4941_v12 = vld [vmem:[#allocation4_spill] sm:$0xff] }
 0x10f   : > { %v1225_v29 = vpop.f32.mrf.mxu1  ;;  %2255 = vmatprep.subr.bf16.mxu1 %v3693_v33  ;;  %2136 = vmatprep.mubr.bf16.mxu0 %v3518_v37  ;;  %v219_v30 = vsub.f32 %v3179_v20, %v203_v21  ;;  %v3180_v25 = vld [vmem:[%s3367_s5 + $0x38] sm:$0xff]  ;;  %v212_v20 = vunpack.c.h.bf16 %v3525_v42 }
 0x110   : > { %4940 = vst [vmem:[#allocation86_spill] sm:$0xff] %v4455_v28  ;;  %v4463_v19 = vadd.f32 %v1225_v29, %v1172_v53  ;;  %2189 = vmatprep.mubr.bf16.mxu1 %v3523_v41  ;;  %v223_v31 = vsub.f32 %v3180_v25, %v207_v24  ;;  %v1174_v28 = vpop.f32.mrf.mxu0  ;;  %v3186_v24 = vld [vmem:[%s3367_s5 + $0x68] sm:$0xff]  ;;  %v3188_v53 = vld [vmem:[%s3367_s5 + $0x78] sm:$0xff]  ;;  %v214_v25 = vunpack.c.h.bf16 %v3536_v47 }
 0x111   : > { %v1227_v13 = vpop.f32.mrf.mxu1  ;;  %2203 = vmatpush1.bf16.msra.mxu0 %v3700_v34  ;;  %v4943_v34 = vld [vmem:[#allocation6_spill] sm:$0xff] }
 0x112   : > { %v4469_v18 = vadd.f32 %v1227_v13, %v1174_v28  ;;  %2256 = vmatpush1.bf16.msra.mxu1 %v3705_v35  ;;  %v1176_v32 = vpop.f32.mrf.mxu0  ;;  %2204 = vmatprep.subr.bf16.mxu0 %v3712_v36  ;;  %v4479_v21 = vpack.c.bf16 %v223_v31, %v219_v30  ;;  %v4942_v13 = vld [vmem:[#allocation5_spill] sm:$0xff]  ;;  %v4944_v35 = vld [vmem:[#allocation7_spill] sm:$0xff]  ;;  %v4945_v36 = vld [vmem:[#allocation8_spill] sm:$0xff]  ;;  %v210_v30 = vunpack.c.l.bf16 %v3536_v47 }
 0x113   : > { %v1229_v33 = vpop.f32.mrf.mxu1  ;;  %2257 = vmatprep.subr.bf16.mxu1 %v3719_v38  ;;  %v4946_v38 = vld [vmem:[#allocation9_spill] sm:$0xff]  ;;  %v4959_v31 = vld [vmem:[#allocation20_spill] sm:$0xff] }
 0x114   : > { %v4475_v22 = vadd.f32 %v1229_v33, %v1176_v32  ;;  %2137 = vmatmul.mubr.bf16.gmra.mxu0 %v3525_v42  ;;  %v4960_v32 = vld [vmem:[#allocation21_spill] sm:$0xff] }
 0x115   : > { %2190 = vmatmul.mubr.bf16.gmra.mxu1 %v3536_v47  ;;  %2205 = vmatpush1.bf16.msra.mxu0 %v3726_v39  ;;  %v4527_v39 = vpop.f32.mrf.mxu0 }
 0x116   : > { %2258 = vmatpush1.bf16.msra.mxu1 %v3731_v40  ;;  %2206 = vmatprep.subr.bf16.mxu0 %v3738_v43  ;;  %v4529_v40 = vpop.f32.mrf.mxu1  ;;  %v4947_v43 = vld [vmem:[#allocation10_spill] sm:$0xff] }
 0x117   : > { %2259 = vmatprep.subr.bf16.mxu1 %v3745_v44  ;;  %2232 = vmatprep.mubr.bf16.mxu0 %v4477_v23  ;;  %v4948_v44 = vld [vmem:[#allocation11_spill] sm:$0xff] }
 0x118   : > { %2285 = vmatprep.mubr.bf16.mxu1 %v4479_v21 }
 0x119   : > { %2207 = vmatpush1.bf16.msra.mxu0 %v3750_v45  ;;  %v4949_v45 = vld [vmem:[#allocation2_spill] sm:$0xff] }
 0x11a   : > { %2260 = vmatpush1.bf16.msra.mxu1 %v3755_v46  ;;  %2208 = vmatprep.subr.bf16.mxu0 %v3764_v48  ;;  %v200_v46 = vunpack.c.l.bf16 %v4949_v45  ;;  %v204_v48 = vunpack.c.h.bf16 %v4949_v45 }
 0x11b   : > { %2261 = vmatprep.subr.bf16.mxu1 %v3771_v49  ;;  %v4950_v49 = vld [vmem:[#allocation3_spill] sm:$0xff] }
 0x11d   : > { %2209 = vmatpush1.bf16.msra.mxu0 %v3778_v50  ;;  %v202_v50 = vunpack.c.l.bf16 %v4950_v49 }
 0x11e   : > { %2262 = vmatpush1.bf16.msra.mxu1 %v3783_v51  ;;  %2210 = vmatprep.subr.bf16.mxu0 %v3790_v52  ;;  %v206_v51 = vunpack.c.h.bf16 %v4950_v49  ;;  %v4951_v52 = vld [vmem:[#allocation12_spill] sm:$0xff] }
 0x11f   : > { %2263 = vmatprep.subr.bf16.mxu1 %v3797_v55  ;;  %v4952_v55 = vld [vmem:[#allocation13_spill] sm:$0xff]  ;;  %v3192_v49 = vld [vmem:[%s3367_s5 + $0x70] sm:$0xff] }
 0x121   : > { %2211 = vmatpush1.bf16.msra.mxu0 %v3802_v56  ;;  %v4539_v56 = vpop.f32.mrf.mxu0 }
 0x122   : > { %2264 = vmatpush1.bf16.msra.mxu1 %v3807_v57  ;;  %2212 = vmatprep.subr.bf16.mxu0 %v3814_v58  ;;  %v4541_v57 = vpop.f32.mrf.mxu1  ;;  %v4953_v58 = vld [vmem:[#allocation14_spill] sm:$0xff] }
 0x123   : > { %2265 = vmatprep.subr.bf16.mxu1 %v3821_v59  ;;  %v4954_v59 = vld [vmem:[#allocation15_spill] sm:$0xff] }
 0x125   : > { %2213 = vmatpush1.bf16.msra.mxu0 %v3826_v60  ;;  %v3181_v60 = vld [vmem:[%s3367_s5] sm:$0xff] }
 0x126   : > { %2266 = vmatpush1.bf16.msra.mxu1 %v3831_v61  ;;  %2214 = vmatprep.subr.bf16.mxu0 %v3838_v62  ;;  %v216_v61 = vsub.f32 %v3181_v60, %v200_v46  ;;  %v3182_v62 = vld [vmem:[%s3367_s5 + $0x20] sm:$0xff]  ;;  %v3191_v46 = vld [vmem:[%s3367_s5 + $0x50] sm:$0xff] }
 0x127   : > { %2267 = vmatprep.subr.bf16.mxu1 %v3845_v63  ;;  %v220_v63 = vsub.f32 %v3182_v62, %v204_v48  ;;  %v226_v48 = vsub.f32 %v3191_v46, %v210_v30  ;;  %v4965_v60 = vld [vmem:[#allocation26_spill] sm:$0xff]  ;;  %v4984_v46 = vld [vmem:[#allocation45_spill] sm:$0xff] }
 0x129   : > { %2215 = vmatpush1.bf16.msra.mxu0 %v3850_v0  ;;  %v209_v0 = vunpack.c.l.bf16 %v3518_v37 }
 0x12a   : > { %2268 = vmatpush1.bf16.msra.mxu1 %v3855_v1  ;;  %2216 = vmatprep.subr.bf16.mxu0 %v3862_v2  ;;  %v213_v1 = vunpack.c.h.bf16 %v3518_v37  ;;  %v211_v2 = vunpack.c.l.bf16 %v3523_v41  ;;  %v4957_v37 = vld [vmem:[#allocation18_spill] sm:$0xff] }
 0x12b   : > { %2269 = vmatprep.subr.bf16.mxu1 %v3869_v3  ;;  %v215_v3 = vunpack.c.h.bf16 %v3523_v41  ;;  %v208_v41 = vunpack.c.l.bf16 %v3525_v42 }
 0x12c   : > { %v229_v26 = vsub.f32 %v3186_v24, %v213_v1  ;;  %v227_v28 = vsub.f32 %v3187_v27, %v211_v2  ;;  %v4974_v27 = vld [vmem:[#allocation35_spill] sm:$0xff] }
 0x12d   : > { %2217 = vmatpush2.bf16.msra.mxu0 %v3874_v4  ;;  %v3183_v4 = vld [vmem:[%s3367_s5 + $0x10] sm:$0xff]  ;;  %v231_v29 = vsub.f32 %v3188_v53, %v215_v3 }
 0x12e   : > { %2270 = vmatpush2.bf16.msra.mxu1 %v3879_v5  ;;  %2218 = vmatprep.subr.bf16.mxu0 %v3886_v6  ;;  %v218_v5 = vsub.f32 %v3183_v4, %v202_v50  ;;  %v3184_v6 = vld [vmem:[%s3367_s5 + $0x30] sm:$0xff]  ;;  %v230_v50 = vsub.f32 %v3192_v49, %v214_v25  ;;  %v4986_v49 = vld [vmem:[#allocation47_spill] sm:$0xff] }
 0x12f   : > { %2271 = vmatprep.subr.bf16.mxu1 %v3893_v7  ;;  %v222_v7 = vsub.f32 %v3184_v6, %v206_v51  ;;  %v4967_v4 = vld [vmem:[#allocation28_spill] sm:$0xff] }
 0x130   : > { %v4603_v2 = vpack.c.bf16 %v230_v50, %v226_v48  ;;  %v4975_v25 = vld [vmem:[#allocation36_spill] sm:$0xff]  ;;  %v4985_v48 = vld [vmem:[#allocation46_spill] sm:$0xff] }
 0x131   : > { %2219 = vmatpush2.bf16.msra.mxu0 %v3898_v8  ;;  %v4955_v8 = vld [vmem:[#allocation16_spill] sm:$0xff]  ;;  %v4568_v54 = vpack.c.bf16 %v222_v7, %v218_v5  ;;  %v4968_v5 = vld [vmem:[#allocation29_spill] sm:$0xff] }
 0x132   : > { %2272 = vmatpush2.bf16.msra.mxu1 %v3903_v9  ;;  %2220 = vmatprep.subr.bf16.mxu0 %v3910_v10  ;;  %v4956_v9 = vld [vmem:[#allocation17_spill] sm:$0xff]  ;;  %v4555_v10 = vpop.f32.mrf.mxu0  ;;  %v4987_v50 = vld [vmem:[#allocation48_spill] sm:$0xff] }
 0x133   : > { %2273 = vmatprep.subr.bf16.mxu1 %v3917_v11  ;;  %v4557_v11 = vpop.f32.mrf.mxu1 }
 0x134   : > { %v4575_v33 = vpop.f32.mrf.mxu0 }
 0x135   : > { %2221 = vmatpush2.bf16.msra.mxu0 %v3922_v14  ;;  %v4958_v14 = vld [vmem:[#allocation19_spill] sm:$0xff] }
 0x136   : > { %2274 = vmatpush2.bf16.msra.mxu1 %v3927_v15  ;;  %2222 = vmatprep.subr.bf16.mxu0 %v3934_v16  ;;  %v4561_v15 = vpack.c.bf16 %v220_v63, %v216_v61  ;;  %v3185_v16 = vld [vmem:[%s3367_s5 + $0x48] sm:$0xff] }
 0x137   : > { %2275 = vmatprep.subr.bf16.mxu1 %v3941_v17  ;;  %v225_v17 = vsub.f32 %v3185_v16, %v209_v0  ;;  %v4966_v61 = vld [vmem:[#allocation27_spill] sm:$0xff]  ;;  %v4971_v16 = vld [vmem:[#allocation32_spill] sm:$0xff] }
 0x139   : > { %2223 = vmatpush2.bf16.msra.mxu0 %v4941_v12  ;;  %v4577_v12 = vpop.f32.mrf.mxu1  ;;  %v4581_v42 = vpack.c.bf16 %v229_v26, %v225_v17  ;;  %v4972_v17 = vld [vmem:[#allocation33_spill] sm:$0xff]  ;;  %v4973_v26 = vld [vmem:[#allocation34_spill] sm:$0xff] }
 0x13a   : > { %2276 = vmatpush2.bf16.msra.mxu1 %v4942_v13  ;;  %2224 = vmatprep.subr.bf16.mxu0 %v4943_v34  ;;  %v4961_v13 = vld [vmem:[#allocation22_spill] sm:$0xff]  ;;  %v4962_v34 = vld [vmem:[#allocation23_spill] sm:$0xff] }
 0x13b   : > { %2277 = vmatprep.subr.bf16.mxu1 %v4944_v35  ;;  %v4583_v35 = vpack.c.bf16 %v231_v29, %v227_v28 }
 0x13d   : > { %2225 = vmatpush2.bf16.msra.mxu0 %v4945_v36  ;;  %v3189_v36 = vld [vmem:[%s3367_s5 + $0x40] sm:$0xff] }
 0x13e   : > { %2278 = vmatpush2.bf16.msra.mxu1 %v4946_v38  ;;  %2226 = vmatprep.subr.bf16.mxu0 %v4947_v43  ;;  %v224_v47 = vsub.f32 %v3189_v36, %v208_v41 }
 0x13f   : > { %2279 = vmatprep.subr.bf16.mxu1 %v4948_v44  ;;  %v3190_v44 = vld [vmem:[%s3367_s5 + $0x60] sm:$0xff]  ;;  %s2784_s5 = sshll.u32 %s5029_s13, 5 }
 0x140   : > { %v228_v45 = vsub.f32 %v3190_v44, %v212_v20  ;;  %v4982_v44 = vld [vmem:[#allocation43_spill] sm:$0xff]  ;;  %s4749_s26 = scalar_lea.vmem %s4769_s3, %s2784_s5 }
 0x141   : > { %2227 = vmatpush2.bf16.msra.mxu0 %v4951_v52  ;;  %v4963_v52 = vld [vmem:[#allocation24_spill] sm:$0xff] }
 0x142   : > { %2280 = vmatpush2.bf16.msra.mxu1 %v4952_v55  ;;  %2228 = vmatprep.subr.bf16.mxu0 %v4953_v58  ;;  %v4964_v55 = vld [vmem:[#allocation25_spill] sm:$0xff]  ;;  %v4601_v1 = vpack.c.bf16 %v228_v45, %v224_v47  ;;  %v4983_v45 = vld [vmem:[#allocation44_spill] sm:$0xff] }
 0x143   : > { %2281 = vmatprep.subr.bf16.mxu1 %v4954_v59 }
 0x145   : > { %2229 = vmatpush2.bf16.msra.mxu0 %v4955_v8  ;;  %v4969_v8 = vld [vmem:[#allocation30_spill] sm:$0xff] }
 0x146   : > { %2282 = vmatpush2.bf16.msra.mxu1 %v4956_v9  ;;  %2230 = vmatprep.subr.bf16.mxu0 %v4957_v37  ;;  %v4970_v9 = vld [vmem:[#allocation31_spill] sm:$0xff] }
 0x147   : > { %2283 = vmatprep.subr.bf16.mxu1 %v4958_v14 }
 0x149   : > { %2231 = vmatpush2.bf16.msra.mxu0 %v4959_v31  ;;  %v4976_v31 = vld [vmem:[#allocation37_spill] sm:$0xff] }
 0x14a   : > { %2284 = vmatpush2.bf16.msra.mxu1 %v4960_v32  ;;  %2306 = vmatprep.subr.bf16.mxu0 %v4961_v13  ;;  %v4977_v13 = vld [vmem:[#allocation38_spill] sm:$0xff] }
 0x14b   : > { %2359 = vmatprep.subr.bf16.mxu1 %v4962_v34  ;;  %v4978_v34 = vld [vmem:[#allocation39_spill] sm:$0xff] }
 0x14c   : > { %v1276_v38 = vpop.f32.mrf.mxu0  ;;  %2233 = vmatmul.mubr.bf16.vlgmr.msra.gmra.mxu0 %v4561_v15 }
 0x14d   : > { %v1329_v43 = vpop.f32.mrf.mxu1  ;;  %2286 = vmatmul.mubr.bf16.vlgmr.msra.gmra.mxu1 %v4568_v54  ;;  %2307 = vmatpush1.bf16.msra.mxu0 %v4963_v52  ;;  %v4988_v52 = vld [vmem:[#allocation49_spill] sm:$0xff] }
 0x14e   : > { %v4591_v51 = vadd.f32 %v1329_v43, %v1276_v38  ;;  %2360 = vmatpush1.bf16.msra.mxu1 %v4964_v55  ;;  %v1278_v58 = vpop.f32.mrf.mxu0  ;;  %2308 = vmatprep.subr.bf16.mxu0 %v4965_v60  ;;  %v4979_v43 = vld [vmem:[#allocation40_spill] sm:$0xff]  ;;  %v4989_v55 = vld [vmem:[#allocation50_spill] sm:$0xff]  ;;  %v4992_v60 = vld [vmem:[#allocation53_spill] sm:$0xff] }
 0x14f   : > { %v1331_v59 = vpop.f32.mrf.mxu1  ;;  %2361 = vmatprep.subr.bf16.mxu1 %v4966_v61  ;;  %2242 = vmatprep.mubr.bf16.mxu0 %v4581_v42  ;;  %v4993_v61 = vld [vmem:[#allocation54_spill] sm:$0xff] }
 0x150   : > { %v4597_v62 = vadd.f32 %v1331_v59, %v1278_v58  ;;  %2295 = vmatprep.mubr.bf16.mxu1 %v4583_v35  ;;  %v1280_v63 = vpop.f32.mrf.mxu0  ;;  %v4990_v58 = vld [vmem:[#allocation51_spill] sm:$0xff]  ;;  %v4991_v59 = vld [vmem:[#allocation52_spill] sm:$0xff] }
 0x151   : > { %v1333_v0 = vpop.f32.mrf.mxu1  ;;  %2309 = vmatpush1.bf16.msra.mxu0 %v4967_v4  ;;  %v4996_v4 = vld [vmem:[#allocation57_spill] sm:$0xff] }
 0x152   : > { %v4605_v3 = vadd.f32 %v1333_v0, %v1280_v63  ;;  %2362 = vmatpush1.bf16.msra.mxu1 %v4968_v5  ;;  %v1282_v6 = vpop.f32.mrf.mxu0  ;;  %2310 = vmatprep.subr.bf16.mxu0 %v4969_v8  ;;  %v4994_v63 = vld [vmem:[#allocation55_spill] sm:$0xff]  ;;  %v4995_v0 = vld [vmem:[#allocation56_spill] sm:$0xff]  ;;  %v4997_v5 = vld [vmem:[#allocation58_spill] sm:$0xff] }
 0x153   : > { %v1335_v7 = vpop.f32.mrf.mxu1  ;;  %2363 = vmatprep.subr.bf16.mxu1 %v4970_v9  ;;  %v5000_v8 = vld [vmem:[#allocation61_spill] sm:$0xff]  ;;  %v5001_v9 = vld [vmem:[#allocation62_spill] sm:$0xff] }
 0x154   : > { %v4611_v37 = vadd.f32 %v1335_v7, %v1282_v6  ;;  %2243 = vmatmul.mubr.bf16.gmra.mxu0 %v4601_v1  ;;  %v1286_v14 = vpop.f32.mrf.mxu0  ;;  %v4998_v6 = vld [vmem:[#allocation59_spill] sm:$0xff]  ;;  %v4999_v7 = vld [vmem:[#allocation60_spill] sm:$0xff] }
 0x155   : > { %2296 = vmatmul.mubr.bf16.gmra.mxu1 %v4603_v2  ;;  %v1339_v41 = vpop.f32.mrf.mxu1  ;;  %2311 = vmatpush1.bf16.msra.mxu0 %v4971_v16  ;;  %v5004_v16 = vld [vmem:[#allocation65_spill] sm:$0xff] }
 0x156   : > { %2364 = vmatpush1.bf16.msra.mxu1 %v4972_v17  ;;  %v4617_v24 = vadd.f32 %v1339_v41, %v1286_v14  ;;  %2312 = vmatprep.subr.bf16.mxu0 %v4973_v26  ;;  %v1288_v28 = vpop.f32.mrf.mxu0  ;;  %v5002_v14 = vld [vmem:[#allocation63_spill] sm:$0xff]  ;;  %v5003_v41 = vld [vmem:[#allocation64_spill] sm:$0xff]  ;;  %v5005_v17 = vld [vmem:[#allocation66_spill] sm:$0xff] }
 0x157   : > { %2365 = vmatprep.subr.bf16.mxu1 %v4974_v27  ;;  %v1341_v53 = vpop.f32.mrf.mxu1  ;;  %2338 = vmatprep.mubr.bf16.mxu0 %v4477_v23  ;;  %v4980_v23 = vld [vmem:[#allocation41_spill] sm:$0xff]  ;;  %v5006_v26 = vld [vmem:[#allocation67_spill] sm:$0xff]  ;;  %v5007_v27 = vld [vmem:[#allocation68_spill] sm:$0xff] }
 0x158   : > { %v4621_v29 = vadd.f32 %v1341_v53, %v1288_v28  ;;  %2391 = vmatprep.mubr.bf16.mxu1 %v4479_v21  ;;  %v1290_v20 = vpop.f32.mrf.mxu0  ;;  %v4981_v21 = vld [vmem:[#allocation42_spill] sm:$0xff]  ;;  %v5008_v28 = vld [vmem:[#allocation69_spill] sm:$0xff] }
 0x159   : > { %v1343_v30 = vpop.f32.mrf.mxu1  ;;  %2313 = vmatpush1.bf16.msra.mxu0 %v4975_v25  ;;  %v5009_v53 = vld [vmem:[#allocation70_spill] sm:$0xff]  ;;  %v5012_v25 = vld [vmem:[#allocation73_spill] sm:$0xff] }
 0x15a   : > { %2366 = vmatpush1.bf16.msra.mxu1 %v4976_v31  ;;  %v4627_v32 = vadd.f32 %v1343_v30, %v1290_v20  ;;  %2314 = vmatprep.subr.bf16.mxu0 %v4977_v13  ;;  %v1292_v36 = vpop.f32.mrf.mxu0  ;;  %v5010_v20 = vld [vmem:[#allocation71_spill] sm:$0xff]  ;;  %v5011_v30 = vld [vmem:[#allocation72_spill] sm:$0xff]  ;;  %v5013_v31 = vld [vmem:[#allocation74_spill] sm:$0xff] }
 0x15b   : > { %2367 = vmatprep.subr.bf16.mxu1 %v4978_v34  ;;  %v1345_v47 = vpop.f32.mrf.mxu1  ;;  %v5014_v13 = vld [vmem:[#allocation75_spill] sm:$0xff]  ;;  %v5015_v34 = vld [vmem:[#allocation76_spill] sm:$0xff] }
 0x15c   : > { %v4631_v38 = vadd.f32 %v1345_v47, %v1292_v36  ;;  %v5016_v36 = vld [vmem:[#allocation77_spill] sm:$0xff]  ;;  %v5017_v47 = vld [vmem:[#allocation78_spill] sm:$0xff] }
 0x15d   : > { %2315 = vmatpush1.bf16.msra.mxu0 %v4979_v43  ;;  %v5018_v43 = vld [vmem:[#allocation79_spill] sm:$0xff] }
 0x15e   : > { %2368 = vmatpush1.bf16.msra.mxu1 %v4980_v23  ;;  %2316 = vmatprep.subr.bf16.mxu0 %v4981_v21  ;;  %v5019_v23 = vld [vmem:[#allocation80_spill] sm:$0xff]  ;;  %v5020_v21 = vld [vmem:[#allocation81_spill] sm:$0xff] }
 0x15f   : > { %2369 = vmatprep.subr.bf16.mxu1 %v4982_v44  ;;  %v5021_v44 = vld [vmem:[#allocation82_spill] sm:$0xff] }
 0x161   : > { %2317 = vmatpush1.bf16.msra.mxu0 %v4983_v45  ;;  %v5022_v45 = vld [vmem:[#allocation83_spill] sm:$0xff] }
 0x162   : > { %2370 = vmatpush1.bf16.msra.mxu1 %v4984_v46  ;;  %2318 = vmatprep.subr.bf16.mxu0 %v4985_v48  ;;  %v5023_v46 = vld [vmem:[#allocation84_spill] sm:$0xff]  ;;  %v5024_v48 = vld [vmem:[#allocation85_spill] sm:$0xff] }
 0x163   : > { %2371 = vmatprep.subr.bf16.mxu1 %v4986_v49 }
 0x165   : > { %2319 = vmatpush1.bf16.msra.mxu0 %v4987_v50 }
 0x166   : > { %2372 = vmatpush1.bf16.msra.mxu1 %v4988_v52  ;;  %2320 = vmatprep.subr.bf16.mxu0 %v4989_v55 }
 0x167   : > { %2373 = vmatprep.subr.bf16.mxu1 %v4990_v58 }
 0x169   : > { %2321 = vmatpush1.bf16.msra.mxu0 %v4991_v59 }
 0x16a   : > { %2374 = vmatpush1.bf16.msra.mxu1 %v4992_v60  ;;  %2322 = vmatprep.subr.bf16.mxu0 %v4993_v61 }
 0x16b   : > { %2375 = vmatprep.subr.bf16.mxu1 %v4994_v63 }
 0x16d   : > { %2323 = vmatpush2.bf16.msra.mxu0 %v4995_v0 }
 0x16e   : > { %2376 = vmatpush2.bf16.msra.mxu1 %v4996_v4  ;;  %2324 = vmatprep.subr.bf16.mxu0 %v4997_v5 }
 0x16f   : > { %2377 = vmatprep.subr.bf16.mxu1 %v4998_v6 }
 0x171   : > { %2325 = vmatpush2.bf16.msra.mxu0 %v4999_v7 }
 0x172   : > { %2378 = vmatpush2.bf16.msra.mxu1 %v5000_v8  ;;  %2326 = vmatprep.subr.bf16.mxu0 %v5001_v9 }
 0x173   : > { %2379 = vmatprep.subr.bf16.mxu1 %v5002_v14 }
 0x175   : > { %2327 = vmatpush2.bf16.msra.mxu0 %v5003_v41 }
 0x176   : > { %2380 = vmatpush2.bf16.msra.mxu1 %v5004_v16  ;;  %2328 = vmatprep.subr.bf16.mxu0 %v5005_v17 }
 0x177   : > { %2381 = vmatprep.subr.bf16.mxu1 %v5006_v26 }
 0x179   : > { %2329 = vmatpush2.bf16.msra.mxu0 %v5007_v27 }
 0x17a   : > { %2382 = vmatpush2.bf16.msra.mxu1 %v5008_v28  ;;  %2330 = vmatprep.subr.bf16.mxu0 %v5009_v53 }
 0x17b   : > { %2383 = vmatprep.subr.bf16.mxu1 %v5010_v20 }
 0x17d   : > { %2331 = vmatpush2.bf16.msra.mxu0 %v5011_v30 }
 0x17e   : > { %2384 = vmatpush2.bf16.msra.mxu1 %v5012_v25  ;;  %2332 = vmatprep.subr.bf16.mxu0 %v5013_v31 }
 0x17f   : > { %2385 = vmatprep.subr.bf16.mxu1 %v5014_v13 }
 0x181   : > { %2333 = vmatpush2.bf16.msra.mxu0 %v5015_v34 }
 0x182   : > { %2386 = vmatpush2.bf16.msra.mxu1 %v5016_v36  ;;  %2334 = vmatprep.subr.bf16.mxu0 %v5017_v47 }
 0x183   : > { %2387 = vmatprep.subr.bf16.mxu1 %v5018_v43 }
 0x185   : > { %2335 = vmatpush2.bf16.msra.mxu0 %v5019_v23 }
 0x186   : > { %2388 = vmatpush2.bf16.msra.mxu1 %v5020_v21  ;;  %2336 = vmatprep.subr.bf16.mxu0 %v5021_v44 }
 0x187   : > { %2389 = vmatprep.subr.bf16.mxu1 %v5022_v45 }
 0x189   : > { %2337 = vmatpush2.bf16.msra.mxu0 %v5023_v46 }
 0x18a   : > { %2390 = vmatpush2.bf16.msra.mxu1 %v5024_v48 }
 0x18c   : > { %2339 = vmatmul.mubr.bf16.vlgmr.msra.gmra.mxu0 %v4561_v15  ;;  %v2022_v49 = vpop.f32.mrf.mxu0 }
 0x18d   : > { %2392 = vmatmul.mubr.bf16.vlgmr.msra.gmra.mxu1 %v4568_v54  ;;  %2348 = vmatprep.mubr.bf16.mxu0 %v4581_v42  ;;  %v2075_v50 = vpop.f32.mrf.mxu1 }
 0x18e   : > { %2401 = vmatprep.mubr.bf16.mxu1 %v4583_v35  ;;  %v2024_v52 = vpop.f32.mrf.mxu0 }
 0x18f   : > { %v2077_v55 = vpop.f32.mrf.mxu1 }
 0x190   : > { %v2026_v58 = vpop.f32.mrf.mxu0 }
 0x191   : > { %v2079_v59 = vpop.f32.mrf.mxu1 }
 0x192   : > { %v2028_v60 = vpop.f32.mrf.mxu0 }
 0x193   : > { %v4685_v61 = vpop.f32.mrf.mxu1 }
 0x194   : > { %2349 = vmatmul.mubr.bf16.gmra.mxu0 %v4601_v1  ;;  %v2032_v15 = vpop.f32.mrf.mxu0 }
 0x195   : > { %2402 = vmatmul.mubr.bf16.gmra.mxu1 %v4603_v2  ;;  %v4687_v63 = vpop.f32.mrf.mxu1 }
 0x196   : > { %v2034_v54 = vpop.f32.mrf.mxu0 }
 0x197   : > { %v4689_v42 = vpop.f32.mrf.mxu1 }
 0x198   : > { %v4691_v35 = vpop.f32.mrf.mxu0 }
 0x199   : > { %v4693_v1 = vpop.f32.mrf.mxu1 }
 0x19a   : > { %v4695_v2 = vpop.f32.mrf.mxu0 }
 0x19b   : > { %v4697_v0 = vpop.f32.mrf.mxu1 }
 0x1cc   : > { %v2128_v4 = vpop.f32.mrf.mxu0 }
 0x1cd   : > { %v2181_v5 = vpop.f32.mrf.mxu1  ;;  %v2129_v6 = vadd.f32 %v2128_v4, %v4591_v51 }
 0x1ce   : > { %v2130_v7 = vpop.f32.mrf.mxu0 }
 0x1cf   : > { %v2183_v8 = vpop.f32.mrf.mxu1  ;;  %v4700_v9 = vadd.f32 %v2181_v5, %v2129_v6  ;;  %v2131_v14 = vadd.f32 %v2130_v7, %v4597_v62  ;;  %v2027_v6 = vadd.f32 %v2026_v58, %v4469_v18 }
 0x1d0   : > { %v2132_v41 = vpop.f32.mrf.mxu0 }
 0x1d1   : > { %v2185_v16 = vpop.f32.mrf.mxu1  ;;  %v4703_v17 = vadd.f32 %v2183_v8, %v2131_v14  ;;  %v2133_v26 = vadd.f32 %v2132_v41, %v4605_v3 }
 0x1d2   : > { %v2134_v27 = vpop.f32.mrf.mxu0 }
 0x1d3   : > { %v2187_v28 = vpop.f32.mrf.mxu1  ;;  %v4706_v53 = vadd.f32 %v2185_v16, %v2133_v26  ;;  %v2135_v20 = vadd.f32 %v2134_v27, %v4611_v37  ;;  %v1236_v26 = vadd.f32 %v4541_v57, %v4539_v56  ;;  %v1240_v56 = vadd.f32 %v4577_v12, %v4575_v33 }
 0x1d4   : > { %v2138_v30 = vpop.f32.mrf.mxu0 }
 0x1d5   : > { %v2191_v51 = vpop.f32.mrf.mxu1  ;;  %v4709_v25 = vadd.f32 %v2187_v28, %v2135_v20  ;;  %v2139_v31 = vadd.f32 %v2138_v30, %v4617_v24  ;;  %v5025_v24 = vld [vmem:[#allocation86_spill] sm:$0xff]  ;;  %v2080_v28 = vadd.f32 %v2079_v59, %v2027_v6 }
 0x1d6   : > { %v2140_v13 = vpop.f32.mrf.mxu0  ;;  %v2023_v48 = vadd.f32 %v2022_v49, %v5025_v24 }
 0x1d7   : > { %v2193_v62 = vpop.f32.mrf.mxu1  ;;  %v2141_v34 = vadd.f32 %v2140_v13, %v4621_v29  ;;  %v4713_v36 = vadd.f32 %v2191_v51, %v2139_v31  ;;  %v2025_v29 = vadd.f32 %v2024_v52, %v4463_v19  ;;  %v2039_v13 = vadd.f32 %v4695_v2, %v1240_v56 }
 0x1d8   : > { %v2142_v47 = vpop.f32.mrf.mxu0  ;;  %v2076_v41 = vadd.f32 %v2075_v50, %v2023_v48 }
 0x1d9   : > { %v2195_v3 = vpop.f32.mrf.mxu1  ;;  %v2143_v43 = vadd.f32 %v2142_v47, %v4627_v32  ;;  %v4716_v23 = vadd.f32 %v2193_v62, %v2141_v34  ;;  %v1234_v32 = vadd.f32 %v4529_v40, %v4527_v39  ;;  %v2078_v49 = vadd.f32 %v2077_v55, %v2025_v29 }
 0x1da   : > { %v2144_v21 = vpop.f32.mrf.mxu0  ;;  %v1238_v39 = vadd.f32 %v4557_v11, %v4555_v10  ;;  %v2035_v40 = vadd.f32 %v2034_v54, %v1236_v26  ;;  %v2092_v2 = vadd.f32 %v4697_v0, %v2039_v13 }
 0x1db   : > { %v2197_v37 = vpop.f32.mrf.mxu1  ;;  %v2145_v44 = vadd.f32 %v2144_v21, %v4631_v38  ;;  %v4719_v45 = vadd.f32 %v2195_v3, %v2143_v43  ;;  %v2029_v38 = vadd.f32 %v2028_v60, %v4475_v22  ;;  %v2033_v19 = vadd.f32 %v2032_v15, %v1234_v32 }
 0x1dc   : > { %v2037_v55 = vadd.f32 %v4691_v35, %v1238_v39 }
 0x1dd   : > { %v4721_v46 = vadd.f32 %v2197_v37, %v2145_v44  ;;  %v2082_v22 = vadd.f32 %v4685_v61, %v2029_v38  ;;  %v2086_v57 = vadd.f32 %v4687_v63, %v2033_v19  ;;  %v2088_v61 = vadd.f32 %v4689_v42, %v2035_v40 }
 0x1de   : > { %v2090_v35 = vadd.f32 %v4693_v1, %v2037_v55 }
 0x20c   : > { %v2234_v4 = vpop.f32.mrf.mxu0 }
 0x20d   : > { %v2287_v5 = vpop.f32.mrf.mxu1 }
 0x20e   : > { %v2288_v7 = vadd.f32 %v2287_v5, %v2234_v4  ;;  %v2236_v8 = vpop.f32.mrf.mxu0 }
 0x20f   : > { %v2289_v14 = vpop.f32.mrf.mxu1 }
 0x210   : > { %v2290_v16 = vadd.f32 %v2289_v14, %v2236_v8  ;;  %v2238_v52 = vpop.f32.mrf.mxu0  ;;  %v2412_v18 = vadd.f32 %v2288_v7, %v2076_v41 }
 0x211   : > { %v2291_v27 = vpop.f32.mrf.mxu1 }
 0x212   : > { %v2292_v58 = vadd.f32 %v2291_v27, %v2238_v52  ;;  %v2413_v20 = vadd.f32 %v2290_v16, %v2078_v49  ;;  %v2240_v50 = vpop.f32.mrf.mxu0  ;;  %v2428_v11 = vmul.f32 %v2412_v18, %v2412_v18 }
 0x213   : > { %v2293_v30 = vpop.f32.mrf.mxu1 }
 0x214   : > { %v2416_v60 = vadd.f32 %v2292_v58, %v2080_v28  ;;  %v2294_v51 = vadd.f32 %v2293_v30, %v2240_v50  ;;  %v2244_v59 = vpop.f32.mrf.mxu0  ;;  %v2429_v62 = vmul.f32 %v2413_v20, %v2413_v20 }
 0x215   : > { %v2297_v10 = vpop.f32.mrf.mxu1 }
 0x216   : > { %v2432_v15 = vmul.f32 %v2416_v60, %v2416_v60  ;;  %v2417_v54 = vadd.f32 %v2294_v51, %v2082_v22  ;;  %v2298_v31 = vadd.f32 %v2297_v10, %v2244_v59  ;;  %v2246_v34 = vpop.f32.mrf.mxu0 }
 0x217   : > { %v2299_v47 = vpop.f32.mrf.mxu1 }
 0x218   : > { %v2444_v33 = vadd.f32 %v2432_v15, %v2428_v11  ;;  %v2433_v12 = vmul.f32 %v2417_v54, %v2417_v54  ;;  %v2420_v63 = vadd.f32 %v2298_v31, %v2086_v57  ;;  %v2300_v3 = vadd.f32 %v2299_v47, %v2246_v34  ;;  %v2248_v43 = vpop.f32.mrf.mxu0 }
 0x219   : > { %v2301_v21 = vpop.f32.mrf.mxu1 }
 0x21a   : > { %v2447_v37 = vadd.f32 %v2433_v12, %v2429_v62  ;;  %v2436_v44 = vmul.f32 %v2420_v63, %v2420_v63  ;;  %v2421_v24 = vadd.f32 %v2300_v3, %v2088_v61  ;;  %v2302_v48 = vadd.f32 %v2301_v21, %v2248_v43  ;;  %v2250_v42 = vpop.f32.mrf.mxu0 }
 0x21b   : > { %v2303_v29 = vpop.f32.mrf.mxu1 }
 0x21c   : > { %v2437_v4 = vmul.f32 %v2421_v24, %v2421_v24  ;;  %v2424_v5 = vadd.f32 %v2302_v48, %v2090_v35  ;;  %v2304_v6 = vadd.f32 %v2303_v29, %v2250_v42  ;;  %v2445_v7 = vadd.f32 %v2444_v33, %v2436_v44 }
 0x21e   : > { %v2440_v32 = vmul.f32 %v2424_v5, %v2424_v5  ;;  %v2425_v8 = vadd.f32 %v2304_v6, %v2092_v2  ;;  %v2448_v1 = vadd.f32 %v2447_v37, %v2437_v4 }
 0x220   : > { %v2446_v14 = vadd.f32 %v2445_v7, %v2440_v32  ;;  %v2441_v41 = vmul.f32 %v2425_v8, %v2425_v8 }
 0x222   : > { %2456 = vst [vmem:[%s4749_s26] sm:$0xff] %v2446_v14  ;;  %v2449_v38 = vadd.f32 %v2448_v1, %v2441_v41 }
 0x224   : > { %2457 = vst [vmem:[%s4749_s26 + $0x8] sm:$0xff] %v2449_v38 }
 0x24c   : > { %v2340_v0 = vpop.f32.mrf.mxu0 }
 0x24d   : > { %v2393_v16 = vpop.f32.mrf.mxu1 }
 0x24e   : > { %v2394_v26 = vadd.f32 %v2393_v16, %v2340_v0  ;;  %v2342_v49 = vpop.f32.mrf.mxu0 }
 0x24f   : > { %v2395_v19 = vpop.f32.mrf.mxu1 }
 0x250   : > { %v2396_v52 = vadd.f32 %v2395_v19, %v2342_v49  ;;  %v2344_v27 = vpop.f32.mrf.mxu0  ;;  %v2414_v18 = vadd.f32 %v2394_v26, %v4700_v9 }
 0x251   : > { %v2397_v28 = vpop.f32.mrf.mxu1 }
 0x252   : > { %v2398_v58 = vadd.f32 %v2397_v28, %v2344_v27  ;;  %v2415_v39 = vadd.f32 %v2396_v52, %v4703_v17  ;;  %v2346_v40 = vpop.f32.mrf.mxu0  ;;  %v2430_v51 = vmul.f32 %v2414_v18, %v2414_v18 }
 0x253   : > { %v2399_v20 = vpop.f32.mrf.mxu1 }
 0x254   : > { %v2418_v50 = vadd.f32 %v2398_v58, %v4706_v53  ;;  %v2400_v30 = vadd.f32 %v2399_v20, %v2346_v40  ;;  %v2350_v22 = vpop.f32.mrf.mxu0  ;;  %v2431_v59 = vmul.f32 %v2415_v39, %v2415_v39 }
 0x255   : > { %v2403_v60 = vpop.f32.mrf.mxu1 }
 0x256   : > { %v2434_v56 = vmul.f32 %v2418_v50, %v2418_v50  ;;  %v2419_v57 = vadd.f32 %v2400_v30, %v4709_v25  ;;  %v2404_v55 = vadd.f32 %v2403_v60, %v2350_v22  ;;  %v2352_v10 = vpop.f32.mrf.mxu0 }
 0x257   : > { %v2405_v11 = vpop.f32.mrf.mxu1 }
 0x258   : > { %v2450_v15 = vadd.f32 %v2434_v56, %v2430_v51  ;;  %v2435_v9 = vmul.f32 %v2419_v57, %v2419_v57  ;;  %v2422_v54 = vadd.f32 %v2404_v55, %v4713_v36  ;;  %v2406_v17 = vadd.f32 %v2405_v11, %v2352_v10  ;;  %v2354_v31 = vpop.f32.mrf.mxu0 }
 0x259   : > { %v2407_v61 = vpop.f32.mrf.mxu1 }
 0x25a   : > { %v2453_v53 = vadd.f32 %v2435_v9, %v2431_v59  ;;  %v2438_v13 = vmul.f32 %v2422_v54, %v2422_v54  ;;  %v2423_v62 = vadd.f32 %v2406_v17, %v4716_v23  ;;  %v2408_v34 = vadd.f32 %v2407_v61, %v2354_v31  ;;  %v2356_v47 = vpop.f32.mrf.mxu0 }
 0x25b   : > { %v2409_v25 = vpop.f32.mrf.mxu1 }
 0x25c   : > { %v2451_v33 = vadd.f32 %v2450_v15, %v2438_v13  ;;  %v2439_v12 = vmul.f32 %v2423_v62, %v2423_v62  ;;  %v2426_v63 = vadd.f32 %v2408_v34, %v4719_v45  ;;  %v2410_v3 = vadd.f32 %v2409_v25, %v2356_v47 }
 0x25e   : > { %v2454_v35 = vadd.f32 %v2453_v53, %v2439_v12  ;;  %v2442_v43 = vmul.f32 %v2426_v63, %v2426_v63  ;;  %v2427_v36 = vadd.f32 %v2410_v3, %v4721_v46 }
 0x260   : > { %v2452_v21 = vadd.f32 %v2451_v33, %v2442_v43  ;;  %v2443_v37 = vmul.f32 %v2427_v36, %v2427_v36 }
 0x262   : > { %2458 = vst [vmem:[%s4749_s26 + $0x10] sm:$0xff] %v2452_v21  ;;  %v2455_v44 = vadd.f32 %v2454_v35, %v2443_v37 }
 0x264   : > { %2459 = vst [vmem:[%s4749_s26 + $0x18] sm:$0xff] %v2455_v44 }
 0x265 PF: > { %s13_s12 = sadd.s32 1, %s3199_s12  }
 0x266   : > { %p10_p5 = scmp.ge.s32.totalorder %s13_s12, 4  }
 0x268   :  { %12 = sbr.rel (!%p10_p5) target bundleno = 1 (0x1), region = 62 }

</bundles_post_ra>
